<compile_context>
chip_gen: v5e
topology: v5e:2x2
jax: 0.10.0
libtpu: 0.0.40
codegen_flags: <defaults>
</compile_context>

<pallas_src>
import functools

import numpy as np
import jax
import jax.numpy as jnp
from jax import lax
from jax.experimental import pallas as pl
from jax.experimental.pallas import tpu as pltpu

# ----------------------------- configuration --------------------------------
B = 2          # episode batch size  (batch_size)
WAY = 5        # num_classes
SHOT = 1       # shot_num
QNUM = 8       # queries per episode
C_IN = 8       # input image channels
H = 4          # spatial height
W_SP = 4       # spatial width
D = 128        # encoder feature dimension
K = 5          # neighbor_k
DIL = 5        # FC_layer Conv1d dilation (fixed in the module)
FUSION = 2     # fusion_num for 'M2L_cos_match'
HW = H * W_SP
BN_EPS = 1e-5


# --------------------------- fused episode kernel ----------------------------
def _fused_kernel(x_ref, w_ref, b_ref, gb_ref, fcw_ref, out_ref, *,
                  Q, WS, HW, D, WAY, SHOT, K, DIL, FUSION):
    WSHW = WS * HW          # support local descriptors per episode
    QHW = Q * HW            # query local descriptors per episode
    seg = SHOT * HW         # support descriptors per class

    # ---------------- encoder stand-in (fused; no HBM feature round-trip) ----
    # x: support pixels first, then query pixels, channels-last.
    x = x_ref[0]                                                    # (WSHW+QHW, C)
    f = jnp.dot(x, w_ref[...], preferred_element_type=jnp.float32) + b_ref[...]
    f = jnp.maximum(f, 0.0)                                         # (WSHW+QHW, D)
    sf = f[:WSHW]                                                   # support descriptors
    qf = f[WSHW:]                                                   # query descriptors

    # ---------------- L2 normalize along D (lane axis); rsqrt -> EUP ---------
    # torch asserts all descriptor norms > 0; the tiny floor only guards NaN
    # on degenerate (all-zero after ReLU) descriptors and is exact otherwise.
    sn = sf * lax.rsqrt(jnp.maximum(jnp.sum(sf * sf, axis=1, keepdims=True), 1e-24))
    qn = qf * lax.rsqrt(jnp.maximum(jnp.sum(qf * qf, axis=1, keepdims=True), 1e-24))

    # ---------------- class prototypes / per-query means ---------------------
    # mean over HW then over shot == mean over all shot*HW (equal group sizes)
    proto = jnp.mean(sn.reshape(WAY, seg, D), axis=1)               # (WAY, D)
    q_mean = jnp.mean(qn.reshape(Q, HW, D), axis=1)                 # (Q, D)

    dn = (((1,), (1,)), ((), ()))                                   # contract last dims
    logits_cos = lax.dot_general(q_mean, proto, dn,
                                 preferred_element_type=jnp.float32)  # (Q, WAY)

    # ---------------- all-pairs inner products, transposed -------------------
    # ip_t[w, s, q*HW+h] = <sn[w*seg+s], qn[q*HW+h]> : every per-class slice is
    # lane-dense (128 lanes) instead of a 16-lane masked column block.
    ip_t = lax.dot_general(sn, qn, dn,
                           preferred_element_type=jnp.float32)       # (WSHW, QHW)
    cur = ip_t.reshape(WAY, seg, QHW)

    # top-k over the support descriptors of each class, vectorized across all
    # classes: K segmented maxima instead of WAY*K lane-masked passes.
    acc = jnp.zeros((WAY, 1, QHW), jnp.float32)
    for _ in range(K):
        m = jnp.max(cur, axis=1, keepdims=True)                     # (WAY, 1, QHW)
        acc = acc + m
        # TODO(synk): torch.topk keeps duplicate-valued entries separately;
        # exact ties are masked jointly here (zero-probability for float data).
        cur = jnp.where(cur >= m, -jnp.inf, cur)
    acc2 = acc.reshape(WAY, QHW)                                    # top-k sums

    # sim[q, w] = mean over HW query descriptors and K of the top-k values.
    # One 128-deep pooling matmul avoids a lane-splitting relayout/transpose.
    qr = lax.broadcasted_iota(jnp.int32, (Q, QHW), 0)
    qc = lax.broadcasted_iota(jnp.int32, (Q, QHW), 1)
    pool = jnp.where((qc >= qr * HW) & (qc < (qr + 1) * HW),
                     1.0 / (HW * K), 0.0).astype(jnp.float32)       # (Q, QHW)
    sim = lax.dot_general(pool, acc2, dn,
                          preferred_element_type=jnp.float32)        # (Q, WAY)

    # ---------------- BatchNorm1d (training-mode batch stats, affine) --------
    # gamma/beta are pre-split by the wrapper into the two WAY-wide column
    # blocks of feat = [logits_cos | sim], so no concatenation is needed:
    # gb rows = [gamma_lo, gamma_hi, beta_lo, beta_hi].
    gb = gb_ref[...]

    def _bn(block, g, b_):
        mu = jnp.mean(block, axis=0, keepdims=True)
        var = jnp.mean((block - mu) ** 2, axis=0, keepdims=True)
        return (block - mu) * lax.rsqrt(var + BN_EPS) * g + b_

    bn_lo = _bn(logits_cos, gb[0:1, :], gb[2:3, :])                 # (Q, WAY)
    bn_hi = _bn(sim,        gb[1:2, :], gb[3:4, :])                 # (Q, WAY)

    # ---------------- Conv1d(1, 1, kernel_size=FUSION, dilation=DIL, no bias)
    w0 = fcw_ref[0]                                                 # SMEM scalars
    w1 = fcw_ref[1]
    if DIL == WAY and FUSION == 2:
        # out_len == WAY and the taps (i, i+DIL) never straddle lo/hi blocks.
        out = w0 * bn_lo + w1 * bn_hi                               # (Q, WAY)
    else:
        feat = jnp.concatenate([bn_lo, bn_hi], axis=1)              # (Q, 2*WAY)
        out_len = FUSION * WAY - DIL
        out = w0 * feat[:, 0:out_len] + w1 * feat[:, DIL:DIL + out_len]
    out_ref[...] = out.reshape((1,) + out.shape)


# ------------------------------ forward wrapper ------------------------------
def meta_baseline_forward(x_shot, x_query, params):
    b, way, shot, c, hs, ws = x_shot.shape
    q = x_query.shape[1]
    hw = hs * ws
    d = params["w_enc"].shape[1]

    # NCHW -> NHWC -> per-episode flattened local-descriptor pixels;
    # support first, then query, concatenated into ONE kernel input so the
    # encoder + similarity run in a single fused pallas_call.
    xs = jnp.transpose(x_shot.reshape(b, way * shot, c, hs, ws),
                       (0, 1, 3, 4, 2)).reshape(b, way * shot * hw, c)
    xq = jnp.transpose(x_query, (0, 1, 3, 4, 2)).reshape(b, q * hw, c)
    x_all = jnp.concatenate([xs, xq], axis=1)                       # (b, M, c)
    m_tot = x_all.shape[1]

    # gamma/beta pre-split into the two WAY-wide column blocks of feat.
    gamma2 = params["gamma"].reshape(FUSION, way)
    beta2 = params["beta"].reshape(FUSION, way)
    gb = jnp.concatenate([gamma2, beta2], axis=0)                   # (4, way)

    out_len = FUSION * way - DIL
    kernel = functools.partial(
        _fused_kernel, Q=q, WS=way * shot, HW=hw, D=d,
        WAY=way, SHOT=shot, K=K, DIL=DIL, FUSION=FUSION)

    return pl.pallas_call(
        kernel,
        out_shape=jax.ShapeDtypeStruct((b, q, out_len), jnp.float32),
        grid=(b,),
        in_specs=[
            pl.BlockSpec((1, m_tot, c), lambda i: (i, 0, 0)),        # pixels
            pl.BlockSpec((c, d), lambda i: (0, 0)),                  # encoder W
            pl.BlockSpec((1, d), lambda i: (0, 0)),                  # encoder b
            pl.BlockSpec((2 * FUSION, way), lambda i: (0, 0)),       # gamma/beta
            pl.BlockSpec(memory_space=pltpu.MemorySpace.SMEM),       # fc_w scalars
        ],
        out_specs=pl.BlockSpec((1, q, out_len), lambda i: (i, 0, 0)),
        compiler_params=pltpu.CompilerParams(
            dimension_semantics=("parallel",)),                      # 2 TCs on v7x
    )(x_all, params["w_enc"], params["b_enc"].reshape(1, d), gb, params["fc_w"])


# ------------------------------ pure-JAX reference ---------------------------
def reference_forward(x_shot, x_query, params):
    b, way, shot, c, hs, ws = x_shot.shape
    q = x_query.shape[1]
    hw = hs * ws
    xs = x_shot.reshape(-1, c, hs, ws)
    xq = x_query.reshape(-1, c, hs, ws)
    xt = jnp.concatenate([xs, xq], 0)
    f = jnp.einsum("nchw,cd->ndhw", xt, params["w_enc"]) + params["b_enc"][None, :, None, None]
    f = jnp.maximum(f, 0.0)
    ns = xs.shape[0]
    d = params["w_enc"].shape[1]
    fs = f[:ns].reshape(b, way, shot, d, hs, ws)
    fq = f[ns:].reshape(b, q, d, hs, ws)
    input1 = jnp.transpose(fq, (0, 1, 3, 4, 2)).reshape(b, q, hw, d)
    input2 = jnp.transpose(fs, (0, 1, 2, 4, 5, 3)).reshape(b, way * shot, hw, d)
    outs = []
    for i in range(b):
        i1, i2 = input1[i], input2[i]
        qn = i1 / jnp.linalg.norm(i1, axis=2, keepdims=True)
        sn = i2 / jnp.linalg.norm(i2, axis=2, keepdims=True)
        proto = sn.reshape(way, shot, hw, d).mean(2).mean(1)
        qm = qn.mean(1)
        logits_cos = qm @ proto.T
        snl = sn.reshape(way, shot * hw, d)
        ipm = jnp.einsum("qhd,wsd->qwhs", qn, snl)
        topv = jax.lax.top_k(ipm, K)[0]
        sim = topv.mean(-1).mean(-1)
        feat = jnp.concatenate([logits_cos, sim], 1)
        mu = feat.mean(0)
        var = feat.var(0)
        bn = (feat - mu) / jnp.sqrt(var + BN_EPS) * params["gamma"] + params["beta"]
        out_len = 2 * way - DIL
        out = params["fc_w"][0] * bn[:, :out_len] + params["fc_w"][1] * bn[:, DIL:DIL + out_len]
        outs.append(out)
    return jnp.stack(outs)


# ------------------------------------ main -----------------------------------
if __name__ == "__main__":
    key = jax.random.PRNGKey(0)
    k1, k2, k3, k4, k5 = jax.random.split(key, 5)

    x_shot = jax.random.normal(k1, (B, WAY, SHOT, C_IN, H, W_SP), jnp.float32)
    x_query = jax.random.normal(k2, (B, QNUM, C_IN, H, W_SP), jnp.float32)

    params = dict(
        # synthetic encoder (deterministic init) standing in for models.make(encoder)
        w_enc=jax.random.normal(k3, (C_IN, D), jnp.float32) / np.sqrt(C_IN),
        b_enc=0.1 * jax.random.normal(k4, (D,), jnp.float32),
        # Norm_layer = BatchNorm1d(num_classes * fusion_num, affine=True) defaults
        gamma=jnp.ones((WAY * FUSION,), jnp.float32),
        beta=jnp.zeros((WAY * FUSION,), jnp.float32),
        # FC_layer = Conv1d(1, 1, kernel_size=fusion_num, dilation=5, bias=False)
        fc_w=0.5 * jax.random.normal(k5, (FUSION,), jnp.float32),
        # temp parameter exists in the module but is unused on the M2L_cos_match path
        temp=jnp.float32(10.0),
    )

    logits = meta_baseline_forward(x_shot, x_query, params)
    logits = jax.block_until_ready(logits)

    ref = reference_forward(x_shot, x_query, params)
    np.testing.assert_allclose(np.asarray(logits), np.asarray(ref), rtol=2e-3, atol=2e-3)

    print("KERNEL_OK")
</pallas_src>

<mosaic_0001>
module attributes {stable_mosaic.version = 11 : i64} {
  func.func @_fused_kernel(%arg0: i32, %arg1: memref<1x208x8xf32, #tpu.memory_space<vmem>>, %arg2: memref<8x128xf32, #tpu.memory_space<vmem>>, %arg3: memref<1x128xf32, #tpu.memory_space<vmem>>, %arg4: memref<4x5xf32, #tpu.memory_space<vmem>>, %arg5: memref<2xf32, #tpu.memory_space<smem>>, %arg6: memref<1x8x5xf32, #tpu.memory_space<vmem>>) attributes {dimension_semantics = [#tpu.dimension_semantics<parallel>], iteration_bounds = array<i64: 2>, scalar_prefetch = 0 : i64, scratch_operands = 0 : i64, tpu.core_type = #tpu.core_type<tc>, window_params = [{transform_indices = @transform_0, window_bounds = array<i64: 1, 208, 8>}, {pipeline_mode = #tpu.pipeline_mode<synchronous>, transform_indices = @transform_1, window_bounds = array<i64: 8, 128>}, {pipeline_mode = #tpu.pipeline_mode<synchronous>, transform_indices = @transform_2, window_bounds = array<i64: 1, 128>}, {pipeline_mode = #tpu.pipeline_mode<synchronous>, transform_indices = @transform_3, window_bounds = array<i64: 4, 5>}, {transform_indices = @transform_4, window_bounds = array<i64: 2>}, {transform_indices = @transform_5, window_bounds = array<i64: 1, 8, 5>}]} {
    %c0 = arith.constant 0 : index
    %c0_0 = arith.constant 0 : index
    %c0_1 = arith.constant 0 : index
    %0 = vector.load %arg1[%c0, %c0_0, %c0_1] : memref<1x208x8xf32, #tpu.memory_space<vmem>>, vector<1x208x8xf32>
    %1 = vector.shape_cast %0 : vector<1x208x8xf32> to vector<208x8xf32>
    %c0_2 = arith.constant 0 : index
    %c0_3 = arith.constant 0 : index
    %2 = vector.load %arg2[%c0_2, %c0_3] : memref<8x128xf32, #tpu.memory_space<vmem>>, vector<8x128xf32>
    %cst = arith.constant dense<0.000000e+00> : vector<208x128xf32>
    %3 = tpu.matmul %1, %2, %cst {dimension_numbers = #tpu.dot_dimension_numbers<[1], [0], [0], [1], [0, 0, 1, 1], [], []>} : vector<208x8xf32>, vector<8x128xf32>, vector<208x128xf32> -> vector<208x128xf32>
    %c0_4 = arith.constant 0 : index
    %c0_5 = arith.constant 0 : index
    %4 = vector.load %arg3[%c0_4, %c0_5] : memref<1x128xf32, #tpu.memory_space<vmem>>, vector<1x128xf32>
    %5 = vector.broadcast %4 : vector<1x128xf32> to vector<208x128xf32>
    %6 = arith.addf %3, %5 : vector<208x128xf32>
    %cst_6 = arith.constant 0.000000e+00 : f32
    %7 = vector.broadcast %cst_6 : f32 to vector<208x128xf32>
    %8 = arith.maximumf %6, %7 : vector<208x128xf32>
    %9 = vector.extract_strided_slice %8 {offsets = [0, 0], sizes = [80, 128], strides = [1, 1]} : vector<208x128xf32> to vector<80x128xf32>
    %10 = vector.extract_strided_slice %8 {offsets = [80, 0], sizes = [128, 128], strides = [1, 1]} : vector<208x128xf32> to vector<128x128xf32>
    %11 = arith.mulf %9, %9 : vector<80x128xf32>
    %cst_7 = arith.constant dense<0.000000e+00> : vector<80xf32>
    %12 = vector.multi_reduction <add>, %11, %cst_7 [1] : vector<80x128xf32> to vector<80xf32>
    %13 = vector.shape_cast %12 : vector<80xf32> to vector<80x1xf32>
    %cst_8 = arith.constant 1.000000e-24 : f32
    %14 = vector.broadcast %cst_8 : f32 to vector<80x1xf32>
    %15 = arith.maximumf %13, %14 : vector<80x1xf32>
    %16 = math.rsqrt %15 : vector<80x1xf32>
    %17 = vector.broadcast %16 : vector<80x1xf32> to vector<80x128xf32>
    %18 = arith.mulf %9, %17 : vector<80x128xf32>
    %19 = arith.mulf %10, %10 : vector<128x128xf32>
    %cst_9 = arith.constant dense<0.000000e+00> : vector<128xf32>
    %20 = vector.multi_reduction <add>, %19, %cst_9 [1] : vector<128x128xf32> to vector<128xf32>
    %21 = vector.shape_cast %20 : vector<128xf32> to vector<128x1xf32>
    %cst_10 = arith.constant 1.000000e-24 : f32
    %22 = vector.broadcast %cst_10 : f32 to vector<128x1xf32>
    %23 = arith.maximumf %21, %22 : vector<128x1xf32>
    %24 = math.rsqrt %23 : vector<128x1xf32>
    %25 = vector.broadcast %24 : vector<128x1xf32> to vector<128x128xf32>
    %26 = arith.mulf %10, %25 : vector<128x128xf32>
    %27 = vector.shape_cast %18 : vector<80x128xf32> to vector<5x16x128xf32>
    %cst_11 = arith.constant dense<0.000000e+00> : vector<5x128xf32>
    %28 = vector.multi_reduction <add>, %27, %cst_11 [1] : vector<5x16x128xf32> to vector<5x128xf32>
    %cst_12 = arith.constant 1.600000e+01 : f32
    %29 = vector.broadcast %cst_12 : f32 to vector<5x128xf32>
    %30 = arith.divf %28, %29 : vector<5x128xf32>
    %31 = vector.shape_cast %26 : vector<128x128xf32> to vector<8x16x128xf32>
    %cst_13 = arith.constant dense<0.000000e+00> : vector<8x128xf32>
    %32 = vector.multi_reduction <add>, %31, %cst_13 [1] : vector<8x16x128xf32> to vector<8x128xf32>
    %cst_14 = arith.constant 1.600000e+01 : f32
    %33 = vector.broadcast %cst_14 : f32 to vector<8x128xf32>
    %34 = arith.divf %32, %33 : vector<8x128xf32>
    %cst_15 = arith.constant dense<0.000000e+00> : vector<8x5xf32>
    %35 = tpu.matmul %34, %30, %cst_15 {dimension_numbers = #tpu.dot_dimension_numbers<[1], [1], [0], [0], [0, 0, 1, 0], [], []>} : vector<8x128xf32>, vector<5x128xf32>, vector<8x5xf32> -> vector<8x5xf32>
    %cst_16 = arith.constant dense<0.000000e+00> : vector<80x128xf32>
    %36 = tpu.matmul %18, %26, %cst_16 {dimension_numbers = #tpu.dot_dimension_numbers<[1], [1], [0], [0], [0, 0, 1, 0], [], []>} : vector<80x128xf32>, vector<128x128xf32>, vector<80x128xf32> -> vector<80x128xf32>
    %37 = vector.shape_cast %36 : vector<80x128xf32> to vector<5x16x128xf32>
    %cst_17 = arith.constant 0.000000e+00 : f32
    %38 = vector.broadcast %cst_17 : f32 to vector<5x1x128xf32>
    %cst_18 = arith.constant dense<0xFF800000> : vector<5x128xf32>
    %39 = vector.multi_reduction <maximumf>, %37, %cst_18 [1] : vector<5x16x128xf32> to vector<5x128xf32>
    %40 = vector.shape_cast %39 : vector<5x128xf32> to vector<5x1x128xf32>
    %41 = arith.addf %38, %40 : vector<5x1x128xf32>
    %42 = vector.broadcast %40 : vector<5x1x128xf32> to vector<5x16x128xf32>
    %43 = arith.cmpf oge, %37, %42 : vector<5x16x128xf32>
    %cst_19 = arith.constant 0xFF800000 : f32
    %44 = vector.broadcast %cst_19 : f32 to vector<5x16x128xf32>
    %45 = arith.select %43, %44, %37 : vector<5x16x128xi1>, vector<5x16x128xf32>
    %cst_20 = arith.constant dense<0xFF800000> : vector<5x128xf32>
    %46 = vector.multi_reduction <maximumf>, %45, %cst_20 [1] : vector<5x16x128xf32> to vector<5x128xf32>
    %47 = vector.shape_cast %46 : vector<5x128xf32> to vector<5x1x128xf32>
    %48 = arith.addf %41, %47 : vector<5x1x128xf32>
    %49 = vector.broadcast %47 : vector<5x1x128xf32> to vector<5x16x128xf32>
    %50 = arith.cmpf oge, %45, %49 : vector<5x16x128xf32>
    %cst_21 = arith.constant 0xFF800000 : f32
    %51 = vector.broadcast %cst_21 : f32 to vector<5x16x128xf32>
    %52 = arith.select %50, %51, %45 : vector<5x16x128xi1>, vector<5x16x128xf32>
    %cst_22 = arith.constant dense<0xFF800000> : vector<5x128xf32>
    %53 = vector.multi_reduction <maximumf>, %52, %cst_22 [1] : vector<5x16x128xf32> to vector<5x128xf32>
    %54 = vector.shape_cast %53 : vector<5x128xf32> to vector<5x1x128xf32>
    %55 = arith.addf %48, %54 : vector<5x1x128xf32>
    %56 = vector.broadcast %54 : vector<5x1x128xf32> to vector<5x16x128xf32>
    %57 = arith.cmpf oge, %52, %56 : vector<5x16x128xf32>
    %cst_23 = arith.constant 0xFF800000 : f32
    %58 = vector.broadcast %cst_23 : f32 to vector<5x16x128xf32>
    %59 = arith.select %57, %58, %52 : vector<5x16x128xi1>, vector<5x16x128xf32>
    %cst_24 = arith.constant dense<0xFF800000> : vector<5x128xf32>
    %60 = vector.multi_reduction <maximumf>, %59, %cst_24 [1] : vector<5x16x128xf32> to vector<5x128xf32>
    %61 = vector.shape_cast %60 : vector<5x128xf32> to vector<5x1x128xf32>
    %62 = arith.addf %55, %61 : vector<5x1x128xf32>
    %63 = vector.broadcast %61 : vector<5x1x128xf32> to vector<5x16x128xf32>
    %64 = arith.cmpf oge, %59, %63 : vector<5x16x128xf32>
    %cst_25 = arith.constant 0xFF800000 : f32
    %65 = vector.broadcast %cst_25 : f32 to vector<5x16x128xf32>
    %66 = arith.select %64, %65, %59 : vector<5x16x128xi1>, vector<5x16x128xf32>
    %cst_26 = arith.constant dense<0xFF800000> : vector<5x128xf32>
    %67 = vector.multi_reduction <maximumf>, %66, %cst_26 [1] : vector<5x16x128xf32> to vector<5x128xf32>
    %68 = vector.shape_cast %67 : vector<5x128xf32> to vector<5x1x128xf32>
    %69 = arith.addf %62, %68 : vector<5x1x128xf32>
    %70 = vector.shape_cast %69 : vector<5x1x128xf32> to vector<5x128xf32>
    %71 = tpu.iota {dimensions = array<i32: 0>} : vector<8x128xi32>
    %72 = tpu.iota {dimensions = array<i32: 1>} : vector<8x128xi32>
    %c16_i32 = arith.constant 16 : i32
    %73 = vector.broadcast %c16_i32 : i32 to vector<8x128xi32>
    %74 = arith.muli %71, %73 : vector<8x128xi32>
    %75 = arith.cmpi sge, %72, %74 : vector<8x128xi32>
    %c1_i32 = arith.constant 1 : i32
    %76 = vector.broadcast %c1_i32 : i32 to vector<8x128xi32>
    %77 = arith.addi %71, %76 : vector<8x128xi32>
    %c16_i32_27 = arith.constant 16 : i32
    %78 = vector.broadcast %c16_i32_27 : i32 to vector<8x128xi32>
    %79 = arith.muli %77, %78 : vector<8x128xi32>
    %80 = arith.cmpi slt, %72, %79 : vector<8x128xi32>
    %81 = arith.andi %75, %80 : vector<8x128xi1>
    %cst_28 = arith.constant 1.250000e-02 : f32
    %cst_29 = arith.constant 0.000000e+00 : f32
    %82 = vector.broadcast %cst_28 : f32 to vector<8x128xf32>
    %83 = vector.broadcast %cst_29 : f32 to vector<8x128xf32>
    %84 = arith.select %81, %82, %83 : vector<8x128xi1>, vector<8x128xf32>
    %cst_30 = arith.constant dense<0.000000e+00> : vector<8x5xf32>
    %85 = tpu.matmul %84, %70, %cst_30 {dimension_numbers = #tpu.dot_dimension_numbers<[1], [1], [0], [0], [0, 0, 1, 0], [], []>} : vector<8x128xf32>, vector<5x128xf32>, vector<8x5xf32> -> vector<8x5xf32>
    %c0_31 = arith.constant 0 : index
    %c0_32 = arith.constant 0 : index
    %86 = vector.load %arg4[%c0_31, %c0_32] : memref<4x5xf32, #tpu.memory_space<vmem>>, vector<4x5xf32>
    %87 = vector.extract_strided_slice %86 {offsets = [0, 0], sizes = [1, 5], strides = [1, 1]} : vector<4x5xf32> to vector<1x5xf32>
    %88 = vector.extract_strided_slice %86 {offsets = [2, 0], sizes = [1, 5], strides = [1, 1]} : vector<4x5xf32> to vector<1x5xf32>
    %cst_33 = arith.constant dense<0.000000e+00> : vector<5xf32>
    %89 = vector.multi_reduction <add>, %35, %cst_33 [0] : vector<8x5xf32> to vector<5xf32>
    %90 = vector.shape_cast %89 : vector<5xf32> to vector<1x5xf32>
    %cst_34 = arith.constant 8.000000e+00 : f32
    %91 = vector.broadcast %cst_34 : f32 to vector<1x5xf32>
    %92 = arith.divf %90, %91 : vector<1x5xf32>
    %93 = vector.broadcast %92 : vector<1x5xf32> to vector<8x5xf32>
    %94 = arith.subf %35, %93 : vector<8x5xf32>
    %95 = arith.mulf %94, %94 : vector<8x5xf32>
    %cst_35 = arith.constant dense<0.000000e+00> : vector<5xf32>
    %96 = vector.multi_reduction <add>, %95, %cst_35 [0] : vector<8x5xf32> to vector<5xf32>
    %97 = vector.shape_cast %96 : vector<5xf32> to vector<1x5xf32>
    %cst_36 = arith.constant 8.000000e+00 : f32
    %98 = vector.broadcast %cst_36 : f32 to vector<1x5xf32>
    %99 = arith.divf %97, %98 : vector<1x5xf32>
    %100 = vector.broadcast %92 : vector<1x5xf32> to vector<8x5xf32>
    %101 = arith.subf %35, %100 : vector<8x5xf32>
    %cst_37 = arith.constant 9.99999974E-6 : f32
    %102 = vector.broadcast %cst_37 : f32 to vector<1x5xf32>
    %103 = arith.addf %99, %102 : vector<1x5xf32>
    %104 = math.rsqrt %103 : vector<1x5xf32>
    %105 = vector.broadcast %104 : vector<1x5xf32> to vector<8x5xf32>
    %106 = arith.mulf %101, %105 : vector<8x5xf32>
    %107 = vector.broadcast %87 : vector<1x5xf32> to vector<8x5xf32>
    %108 = arith.mulf %106, %107 : vector<8x5xf32>
    %109 = vector.broadcast %88 : vector<1x5xf32> to vector<8x5xf32>
    %110 = arith.addf %108, %109 : vector<8x5xf32>
    %111 = vector.extract_strided_slice %86 {offsets = [1, 0], sizes = [1, 5], strides = [1, 1]} : vector<4x5xf32> to vector<1x5xf32>
    %112 = vector.extract_strided_slice %86 {offsets = [3, 0], sizes = [1, 5], strides = [1, 1]} : vector<4x5xf32> to vector<1x5xf32>
    %cst_38 = arith.constant dense<0.000000e+00> : vector<5xf32>
    %113 = vector.multi_reduction <add>, %85, %cst_38 [0] : vector<8x5xf32> to vector<5xf32>
    %114 = vector.shape_cast %113 : vector<5xf32> to vector<1x5xf32>
    %cst_39 = arith.constant 8.000000e+00 : f32
    %115 = vector.broadcast %cst_39 : f32 to vector<1x5xf32>
    %116 = arith.divf %114, %115 : vector<1x5xf32>
    %117 = vector.broadcast %116 : vector<1x5xf32> to vector<8x5xf32>
    %118 = arith.subf %85, %117 : vector<8x5xf32>
    %119 = arith.mulf %118, %118 : vector<8x5xf32>
    %cst_40 = arith.constant dense<0.000000e+00> : vector<5xf32>
    %120 = vector.multi_reduction <add>, %119, %cst_40 [0] : vector<8x5xf32> to vector<5xf32>
    %121 = vector.shape_cast %120 : vector<5xf32> to vector<1x5xf32>
    %cst_41 = arith.constant 8.000000e+00 : f32
    %122 = vector.broadcast %cst_41 : f32 to vector<1x5xf32>
    %123 = arith.divf %121, %122 : vector<1x5xf32>
    %124 = vector.broadcast %116 : vector<1x5xf32> to vector<8x5xf32>
    %125 = arith.subf %85, %124 : vector<8x5xf32>
    %cst_42 = arith.constant 9.99999974E-6 : f32
    %126 = vector.broadcast %cst_42 : f32 to vector<1x5xf32>
    %127 = arith.addf %123, %126 : vector<1x5xf32>
    %128 = math.rsqrt %127 : vector<1x5xf32>
    %129 = vector.broadcast %128 : vector<1x5xf32> to vector<8x5xf32>
    %130 = arith.mulf %125, %129 : vector<8x5xf32>
    %131 = vector.broadcast %111 : vector<1x5xf32> to vector<8x5xf32>
    %132 = arith.mulf %130, %131 : vector<8x5xf32>
    %133 = vector.broadcast %112 : vector<1x5xf32> to vector<8x5xf32>
    %134 = arith.addf %132, %133 : vector<8x5xf32>
    %c0_43 = arith.constant 0 : index
    %135 = memref.load %arg5[%c0_43] : memref<2xf32, #tpu.memory_space<smem>>
    %c1 = arith.constant 1 : index
    %136 = memref.load %arg5[%c1] : memref<2xf32, #tpu.memory_space<smem>>
    %137 = vector.broadcast %135 : f32 to vector<8x5xf32>
    %138 = arith.mulf %137, %110 : vector<8x5xf32>
    %139 = vector.broadcast %136 : f32 to vector<8x5xf32>
    %140 = arith.mulf %139, %134 : vector<8x5xf32>
    %141 = arith.addf %138, %140 : vector<8x5xf32>
    %142 = vector.shape_cast %141 : vector<8x5xf32> to vector<1x8x5xf32>
    %c0_44 = arith.constant 0 : index
    %c0_45 = arith.constant 0 : index
    %c0_46 = arith.constant 0 : index
    %143 = vector.load %arg6[%c0_44, %c0_45, %c0_46] : memref<1x8x5xf32, #tpu.memory_space<vmem>>, vector<1x8x5xf32>
    tpu.vector_store %arg6[%c0_44, %c0_45, %c0_46], %142 {strides = array<i32>} : memref<1x8x5xf32, #tpu.memory_space<vmem>>, vector<1x8x5xf32>,
    return
  }
  func.func @transform_0(%arg0: i32) -> (i32, i32, i32) {
    %c0_i32 = arith.constant 0 : i32
    %c0_i32_0 = arith.constant 0 : i32
    %c0_i32_1 = arith.constant 0 : i32
    return %arg0, %c0_i32, %c0_i32_0 : i32, i32, i32
  }
  func.func @transform_1(%arg0: i32) -> (i32, i32) {
    %c0_i32 = arith.constant 0 : i32
    %c0_i32_0 = arith.constant 0 : i32
    %c0_i32_1 = arith.constant 0 : i32
    return %c0_i32, %c0_i32_0 : i32, i32
  }
  func.func @transform_2(%arg0: i32) -> (i32, i32) {
    %c0_i32 = arith.constant 0 : i32
    %c0_i32_0 = arith.constant 0 : i32
    %c0_i32_1 = arith.constant 0 : i32
    return %c0_i32, %c0_i32_0 : i32, i32
  }
  func.func @transform_3(%arg0: i32) -> (i32, i32) {
    %c0_i32 = arith.constant 0 : i32
    %c0_i32_0 = arith.constant 0 : i32
    %c0_i32_1 = arith.constant 0 : i32
    return %c0_i32, %c0_i32_0 : i32, i32
  }
  func.func @transform_4(%arg0: i32) -> i32 {
    %c0_i32 = arith.constant 0 : i32
    %c0_i32_0 = arith.constant 0 : i32
    return %c0_i32 : i32
  }
  func.func @transform_5(%arg0: i32) -> (i32, i32, i32) {
    %c0_i32 = arith.constant 0 : i32
    %c0_i32_0 = arith.constant 0 : i32
    %c0_i32_1 = arith.constant 0 : i32
    return %arg0, %c0_i32, %c0_i32_0 : i32, i32, i32
  }
}

</mosaic_0001>

<bundles_post_ra>
// kernel: tpu_custom_call.1
= control target key start
LH: loop header
LB: loop body
LE: loop exit
PB: predicated region body
PF: predicated region fallthrough
CT: control target
= control target key end

     0   :  { %10 = vsyncpa [#allocation3], 0  ;;  %s1741_s18 = smov 0   ;;  %s2811_s0 = inlined_call_operand.vmem [shape: f32[2,208,8], index: 0, kind: input, shape index: {}]   ;;  %s2812_s1 = inlined_call_operand.vmem [shape: f32[8,128], index: 1, kind: input, shape index: {}]   ;;  %s2813_s2 = inlined_call_operand.vmem [shape: f32[1,128], index: 2, kind: input, shape index: {}]   ;;  %s2814_s3 = inlined_call_operand.vmem [shape: f32[4,5], index: 3, kind: input, shape index: {}]   ;;  %s2815_s4 = inlined_call_operand.vmem [shape: f32[2], index: 4, kind: input, shape index: {}]   ;;  %s2816_s5 = inlined_call_operand.vmem [shape: f32[2,8,5], index: 5, kind: output, shape index: {}]  }
   0x1 LB: > { %s1540_s19 = sadd.s32 4294967295, %s1705_s18   ;;  %p1542_p0 = scmp.ge.s32.totalorder %s1705_s18, 1  ;;  %s1705_s18 = sphi %s1741_s18, %s16_s18  }
   0x2   : > { %p157_p1 = scmp.lt.s32.totalorder %s1705_s18, 3  ;;  %s178_s22 = sshll.u32 %s2815_s4, 4  ;;  %s179_s22 = int_to_ptr.vmem [resolvable:$true] %s178_s22 }
   0x3   : > { %p1605_p3 = scmp.eq.s32.totalorder %s1540_s19, 0  ;;  %s1707_s23 = smov [#allocation2]  }
   0x4   : > { %p158_p2 = pnand %p1542_p0, %p157_p1 }
   0x6   : > { %p1601_p4 = pneg %p158_p2  ;;  %199 = sbr.rel (%p158_p2) target bundleno = 964 (0x3c4), region = 40 }
   0x8   : > { %p1602_p5 = pnand %p1605_p3, %p1601_p4 }
   0xa   : > { %1604 = dma.vmem_to_smem (!%p1602_p5), %s179_s22, 16, %s1707_s23, [#allocation3]  }
   0xb   : > { %1700 = dma.done.wait (%p1605_p3), [#allocation3], 16  }
   0xc   : > { %1702 = vsyncadd (%p1605_p3), [#allocation3], 4294967280 }
   0xd   : > { %206 = sfence }
   0xe   : > { %v263_v0 = vld [vmem:[%s2812_s1] sm:$0xff]  ;;  %p228_p6 = scmp.lt.s32.totalorder %s1540_s19, 1  ;;  %vm268_vm0 = vcmask 64512   ;;  %s1467_s9 = sld [smem:[#allocation2]] }
   0xf   : > { %1579 = vmatpush.msra.mxu1 %v263_v0  ;;  %362 = vmatpush.msra.mxu0 %v263_v0  ;;  %v1834_v41 = vld [vmem:[%s2813_s2] ss:$0 sm:$0xff]  ;;  %s1576_s10 = sld [smem:[#allocation2 + $0x1]] }
  0x10   : > { %s2882_s19 = smov (!%p228_p6, %s1540_s19), 1 }
  0x11   : > { %s1596_s26 = smul.u32 208, %s2882_s19  ;;  %s1548_s11 = sshll.u32 %s2882_s19, 3 }
  0x12   : > { %s236_s14 = scalar_lea.vmem %s2816_s5, %s1548_s11 }
  0x13   : > { %s1761_s29 = scalar_lea.vmem %s2811_s0, %s1596_s26 }
  0x14   : > { %v250_v1 = vld [vmem:[%s1761_s29 + $0x68] sm:$0xff]  ;;  %v237_v2 = vld [vmem:[%s1761_s29] sm:$0xff]  ;;  %v251_v3 = vld [vmem:[%s1761_s29 + $0x70] sm:$0xff] }
  0x15   : > { %1562 = vmatmul.msk.f32.vlgmr.msra.gmra.mxu1 %vm268_vm0, %v250_v1  ;;  %1549 = vmatmul.msk.f32.vlgmr.msra.gmra.mxu0 %vm268_vm0, %v237_v2  ;;  %v238_v4 = vld [vmem:[%s1761_s29 + $0x8] sm:$0xff]  ;;  %v252_v5 = vld [vmem:[%s1761_s29 + $0x78] sm:$0xff]  ;;  %v239_v6 = vld [vmem:[%s1761_s29 + $0x10] sm:$0xff] }
  0x16   : > { %v253_v7 = vld [vmem:[%s1761_s29 + $0x80] sm:$0xff]  ;;  %v240_v8 = vld [vmem:[%s1761_s29 + $0x18] sm:$0xff]  ;;  %v254_v9 = vld [vmem:[%s1761_s29 + $0x88] sm:$0xff] }
  0x17   : > { %v241_v10 = vld [vmem:[%s1761_s29 + $0x20] sm:$0xff]  ;;  %v255_v11 = vld [vmem:[%s1761_s29 + $0x90] sm:$0xff]  ;;  %v242_v12 = vld [vmem:[%s1761_s29 + $0x28] sm:$0xff] }
  0x18   : > { %v256_v13 = vld [vmem:[%s1761_s29 + $0x98] sm:$0xff]  ;;  %v243_v14 = vld [vmem:[%s1761_s29 + $0x30] sm:$0xff]  ;;  %v257_v15 = vld [vmem:[%s1761_s29 + $0xa0] sm:$0xff] }
  0x19   : > { %v244_v16 = vld [vmem:[%s1761_s29 + $0x38] sm:$0xff]  ;;  %v258_v17 = vld [vmem:[%s1761_s29 + $0xa8] sm:$0xff]  ;;  %v245_v18 = vld [vmem:[%s1761_s29 + $0x40] sm:$0xff] }
  0x1a   : > { %v259_v19 = vld [vmem:[%s1761_s29 + $0xb0] sm:$0xff]  ;;  %v246_v20 = vld [vmem:[%s1761_s29 + $0x48] sm:$0xff]  ;;  %v260_v21 = vld [vmem:[%s1761_s29 + $0xb8] sm:$0xff] }
  0x1b   : > { %v247_v22 = vld [vmem:[%s1761_s29 + $0x50] sm:$0xff]  ;;  %v261_v23 = vld [vmem:[%s1761_s29 + $0xc0] sm:$0xff]  ;;  %v248_v24 = vld [vmem:[%s1761_s29 + $0x58] sm:$0xff] }
  0x1c   : > { %v262_v25 = vld [vmem:[%s1761_s29 + $0xc8] sm:$0xff]  ;;  %v249_v26 = vld [vmem:[%s1761_s29 + $0x60] sm:$0xff] }
  0x1d   : > { %1563 = vmatmul.msk.f32.gmra.mxu1 %vm268_vm0, %v251_v3  ;;  %1550 = vmatmul.msk.f32.gmra.mxu0 %vm268_vm0, %v238_v4 }
  0x25   : > { %1564 = vmatmul.msk.f32.gmra.mxu1 %vm268_vm0, %v252_v5  ;;  %1551 = vmatmul.msk.f32.gmra.mxu0 %vm268_vm0, %v239_v6 }
  0x2d   : > { %1565 = vmatmul.msk.f32.gmra.mxu1 %vm268_vm0, %v253_v7  ;;  %1552 = vmatmul.msk.f32.gmra.mxu0 %vm268_vm0, %v240_v8 }
  0x35   : > { %1566 = vmatmul.msk.f32.gmra.mxu1 %vm268_vm0, %v254_v9  ;;  %1553 = vmatmul.msk.f32.gmra.mxu0 %vm268_vm0, %v241_v10 }
  0x3d   : > { %1567 = vmatmul.msk.f32.gmra.mxu1 %vm268_vm0, %v255_v11  ;;  %1554 = vmatmul.msk.f32.gmra.mxu0 %vm268_vm0, %v242_v12 }
  0x45   : > { %1568 = vmatmul.msk.f32.gmra.mxu1 %vm268_vm0, %v256_v13  ;;  %1555 = vmatmul.msk.f32.gmra.mxu0 %vm268_vm0, %v243_v14 }
  0x4d   : > { %1569 = vmatmul.msk.f32.gmra.mxu1 %vm268_vm0, %v257_v15  ;;  %1556 = vmatmul.msk.f32.gmra.mxu0 %vm268_vm0, %v244_v16 }
  0x55   : > { %1570 = vmatmul.msk.f32.gmra.mxu1 %vm268_vm0, %v258_v17  ;;  %1557 = vmatmul.msk.f32.gmra.mxu0 %vm268_vm0, %v245_v18 }
  0x5d   : > { %1571 = vmatmul.msk.f32.gmra.mxu1 %vm268_vm0, %v259_v19  ;;  %1558 = vmatmul.msk.f32.gmra.mxu0 %vm268_vm0, %v246_v20 }
  0x65   : > { %1572 = vmatmul.msk.f32.gmra.mxu1 %vm268_vm0, %v260_v21  ;;  %1559 = vmatmul.msk.f32.gmra.mxu0 %vm268_vm0, %v247_v22 }
  0x6d   : > { %1573 = vmatmul.msk.f32.gmra.mxu1 %vm268_vm0, %v261_v23  ;;  %1560 = vmatmul.msk.f32.gmra.mxu0 %vm268_vm0, %v248_v24 }
  0x75   : > { %1574 = vmatmul.msk.f32.gmra.mxu1 %vm268_vm0, %v262_v25  ;;  %1561 = vmatmul.msk.f32.gmra.mxu0 %vm268_vm0, %v249_v26 }
  0x92   : > { %v1815_v27 = vpop.f32.mrf.mxu1  ;;  %v1817_v28 = vpop.f32.mrf.mxu0 }
  0x93   : > { %v365_v22 = vadd.f32 %v1834_v41, %v1817_v28 }
  0x9a   : > { %v406_v29 = vpop.f32.mrf.mxu1  ;;  %v367_v30 = vpop.f32.mrf.mxu0 }
  0x9b   : > { %v407_v57 = vadd.f32 %v1834_v41, %v406_v29  ;;  %v368_v4 = vadd.f32 %v1834_v41, %v367_v30  ;;  %v1907_v29 = vmax.f32 %v365_v22, 0.0 }
  0x9d   : > { %v1863_v62 = vmax.f32 %v407_v57, 0.0  ;;  %v1877_v9 = vmax.f32 %v368_v4, 0.0 }
  0x9f   : > { %v622_v3 = vmul.f32 %v1863_v62, %v1863_v62  ;;  %2826 = vst [vmem:[#allocation5_spill] sm:$0xff] %v1877_v9  ;;  %v469_v15 = vmul.f32 %v1877_v9, %v1877_v9 }
  0xa2   : > { %v409_v31 = vpop.f32.mrf.mxu1  ;;  %v1819_v32 = vpop.f32.mrf.mxu0 }
  0xa3   : > { %v410_v12 = vadd.f32 %v1834_v41, %v409_v31 }
  0xa5   : > { %v1891_v18 = vmax.f32 %v410_v12, 0.0 }
  0xa7   : > { %v623_v25 = vmul.f32 %v1891_v18, %v1891_v18 }
  0xaa   : > { %v1821_v33 = vpop.f32.mrf.mxu1  ;;  %v1823_v34 = vpop.f32.mrf.mxu0 }
  0xab   : > { %v413_v28 = vadd.f32 %v1834_v41, %v1821_v33 }
  0xad   : > { %v1925_v33 = vmax.f32 %v413_v28, 0.0 }
  0xb2   : > { %v415_v35 = vpop.f32.mrf.mxu1  ;;  %v1825_v36 = vpop.f32.mrf.mxu0 }
  0xb3   : > { %v416_v50 = vadd.f32 %v1834_v41, %v415_v35  ;;  %v377_v26 = vadd.f32 %v1834_v41, %v1825_v36  ;;  %v374_v35 = vadd.f32 %v1834_v41, %v1823_v34  ;;  %v468_v36 = vmul.f32 %v1907_v29, %v1907_v29 }
  0xb5   : > { %v1851_v54 = vmax.f32 %v416_v50, 0.0  ;;  %v1911_v31 = vmax.f32 %v377_v26, 0.0 }
  0xb7   : > { %v625_v59 = vmul.f32 %v1851_v54, %v1851_v54 }
  0xba   : > { %v418_v37 = vpop.f32.mrf.mxu1  ;;  %v1827_v38 = vpop.f32.mrf.mxu0 }
  0xbb   : > { %v419_v1 = vadd.f32 %v1834_v41, %v418_v37 }
  0xbd   : > { %v1874_v6 = vmax.f32 %v419_v1, 0.0 }
  0xbf   : > { %v626_v14 = vmul.f32 %v1874_v6, %v1874_v6 }
  0xc2   : > { %v421_v39 = vpop.f32.mrf.mxu1  ;;  %v1829_v40 = vpop.f32.mrf.mxu0 }
  0xc3   : > { %v422_v23 = vadd.f32 %v1834_v41, %v421_v39 }
  0xc5   : > { %v1909_v30 = vmax.f32 %v422_v23, 0.0 }
  0xc7   : > { %v627_v37 = vmul.f32 %v1909_v30, %v1909_v30 }
  0xca   : > { %v424_v42 = vpop.f32.mrf.mxu1  ;;  %v1839_v45 = vpop.f32.mrf.mxu0 }
  0xcb   : > { %v425_v43 = vadd.f32 %v1834_v41, %v424_v42  ;;  %v386_v39 = vadd.f32 %v1834_v41, %v1839_v45  ;;  %v472_v42 = vmul.f32 %v1911_v31, %v1911_v31  ;;  %v624_v45 = vmul.f32 %v1925_v33, %v1925_v33 }
  0xcd   : > { %v1837_v44 = vmax.f32 %v425_v43, 0.0  ;;  %v1929_v34 = vmax.f32 %v386_v39, 0.0 }
  0xcf   : > { %v628_v46 = vmul.f32 %v1837_v44, %v1837_v44 }
  0xd1   : > { %654 = vadd.xlane.f32.xlu2 %v628_v46  ;;  %v1927_v46 = vmax.f32 %v374_v35, 0.0 }
  0xd2   : > { %v427_v47 = vpop.f32.mrf.mxu1  ;;  %v1849_v52 = vpop.f32.mrf.mxu0 }
  0xd3   : > { %v428_v48 = vadd.f32 %v1834_v41, %v427_v47  ;;  %v404_v47 = vadd.f32 %v1834_v41, %v1815_v27  ;;  %v471_v50 = vmul.f32 %v1927_v46, %v1927_v46  ;;  %v389_v12 = vadd.f32 %v1834_v41, %v1849_v52 }
  0xd5   : > { %v1844_v49 = vmax.f32 %v428_v48, 0.0  ;;  %v383_v48 = vadd.f32 %v1834_v41, %v1829_v40  ;;  %v371_v40 = vadd.f32 %v1834_v41, %v1819_v32 }
  0xd7   : > { %v629_v51 = vmul.f32 %v1844_v49, %v1844_v49  ;;  %v1943_v57 = vmax.f32 %v383_v48, 0.0 }
  0xd9   : > { %656 = vadd.xlane.f32.xlu2 %v629_v51  ;;  %v475_v51 = vmul.f32 %v1929_v34, %v1929_v34 }
  0xda   : > { %v430_v53 = vpop.f32.mrf.mxu1  ;;  %v1861_v60 = vpop.f32.mrf.mxu0 }
  0xdb   : > { %v431_v55 = vadd.f32 %v1834_v41, %v430_v53  ;;  %v392_v32 = vadd.f32 %v1834_v41, %v1861_v60 }
  0xdd   : > { %v1854_v56 = vmax.f32 %v431_v55, 0.0  ;;  %v1941_v55 = vmax.f32 %v404_v47, 0.0 }
  0xdf   : > { %v630_v58 = vmul.f32 %v1854_v56, %v1854_v56 }
  0xe1   : > { %658 = vadd.xlane.f32.xlu1 %v630_v58  ;;  %648 = vadd.xlane.f32.xlu2 %v625_v59  ;;  %v621_v58 = vmul.f32 %v1941_v55, %v1941_v55  ;;  %v474_v59 = vmul.f32 %v1943_v57, %v1943_v57 }
  0xe2   : > { %v433_v61 = vpop.f32.mrf.mxu1  ;;  %v394_v8 = vpop.f32.mrf.mxu0 }
  0xe3   : > { %v434_v63 = vadd.f32 %v1834_v41, %v433_v61  ;;  %v395_v11 = vadd.f32 %v1834_v41, %v394_v8  ;;  %v380_v8 = vadd.f32 %v1834_v41, %v1827_v38 }
  0xe5   : > { %v1866_v0 = vmax.f32 %v434_v63, 0.0  ;;  %v1889_v16 = vmax.f32 %v395_v11, 0.0  ;;  %v1954_v63 = vmax.f32 %v371_v40, 0.0  ;;  %v1973_v60 = vmax.f32 %v380_v8, 0.0 }
  0xe7   : > { %v631_v2 = vmul.f32 %v1866_v0, %v1866_v0  ;;  %2827 = vst [vmem:[#allocation6_spill] sm:$0xff] %v1889_v16  ;;  %v618_v21 = vmul.f32 %v1889_v16, %v1889_v16 }
  0xe8   : > { %2830 = vst [vmem:[#allocation9_spill] sm:$0xff] %v1973_v60 }
  0xe9   : > { %660 = vadd.xlane.f32.xlu1 %v631_v2  ;;  %642 = vadd.xlane.f32.xlu2 %v622_v3  ;;  %v470_v3 = vmul.f32 %v1954_v63, %v1954_v63 }
  0xea   : > { %v436_v5 = vpop.f32.mrf.mxu1  ;;  %v397_v43 = vpop.f32.mrf.mxu0 }
  0xeb   : > { %v437_v7 = vadd.f32 %v1834_v41, %v436_v5  ;;  %v398_v1 = vadd.f32 %v1834_v41, %v397_v43  ;;  %v1965_v5 = vmax.f32 %v392_v32, 0.0 }
  0xed   : > { %v1879_v10 = vmax.f32 %v437_v7, 0.0  ;;  %v1963_v4 = vmax.f32 %v398_v1, 0.0  ;;  %2829 = vst [vmem:[#allocation8_spill] sm:$0xff] %v1965_v5  ;;  %v477_v11 = vmul.f32 %v1965_v5, %v1965_v5 }
  0xef   : > { %v632_v13 = vmul.f32 %v1879_v10, %v1879_v10  ;;  %2828 = vst [vmem:[#allocation7_spill] sm:$0xff] %v1963_v4  ;;  %v619_v7 = vmul.f32 %v1963_v4, %v1963_v4 }
  0xf1   : > { %662 = vadd.xlane.f32.xlu0 %v632_v13  ;;  %650 = vadd.xlane.f32.xlu1 %v626_v14  ;;  %v473_v13 = vmul.f32 %v1973_v60, %v1973_v60  ;;  %v1979_v14 = vmax.f32 %v389_v12, 0.0 }
  0xf2   : > { %480 = vadd.xlane.f32.xlu2 %v469_v15  ;;  %v439_v17 = vpop.f32.mrf.mxu1  ;;  %v400_v53 = vpop.f32.mrf.mxu0 }
  0xf3   : > { %v440_v19 = vadd.f32 %v1834_v41, %v439_v17  ;;  %v401_v27 = vadd.f32 %v1834_v41, %v400_v53  ;;  %2831 = vst [vmem:[#allocation10_spill] sm:$0xff] %v1979_v14  ;;  %v476_v15 = vmul.f32 %v1979_v14, %v1979_v14 }
  0xf5   : > { %v1894_v20 = vmax.f32 %v440_v19, 0.0  ;;  %v1952_v61 = vmax.f32 %v401_v27, 0.0 }
  0xf7   : > { %v633_v24 = vmul.f32 %v1894_v20, %v1894_v20  ;;  %v620_v2 = vmul.f32 %v1952_v61, %v1952_v61 }
  0xf9   : > { %664 = vadd.xlane.f32.xlu0 %v633_v24  ;;  %644 = vadd.xlane.f32.xlu1 %v623_v25 }
  0xfa   : > { %634 = vadd.xlane.f32.xlu2 %v618_v21 }
 0x101   : > { %652 = vadd.xlane.f32.xlu0 %v627_v37  ;;  %478 = vadd.xlane.f32.xlu1 %v468_v36 }
 0x102   : > { %486 = vadd.xlane.f32.xlu2 %v472_v42 }
 0x109   : > { %646 = vadd.xlane.f32.xlu0 %v624_v45  ;;  %484 = vadd.xlane.f32.xlu1 %v471_v50 }
 0x10a   : > { %492 = vadd.xlane.f32.xlu2 %v475_v51 }
 0x111   : > { %640 = vadd.xlane.f32.xlu0 %v621_v58  ;;  %490 = vadd.xlane.f32.xlu1 %v474_v59 }
 0x119   : > { %482 = vadd.xlane.f32.xlu0 %v470_v3  ;;  %638 = vadd.xlane.f32.xlu1 %v620_v2 }
 0x121   : > { %636 = vadd.xlane.f32.xlu0 %v619_v7  ;;  %496 = vadd.xlane.f32.xlu1 %v477_v11 }
 0x129   : > { %488 = vadd.xlane.f32.xlu0 %v473_v13 }
 0x131   : > { %494 = vadd.xlane.f32.xlu0 %v476_v15 }
 0x144   : > { %v655_v38 = vpop.xlane.xlu2 %654 }
 0x145   : > { %v676_v17 = vmax.f32 %v655_v38, 1e-24 }
 0x147   : > { %1620 = vrsqrt.f32 %v676_v17  ;;  %vm788_vm5 = vweird.f32 %v676_v17 }
 0x14c   : > { %v657_v19 = vpop.xlane.xlu2 %656 }
 0x14d   : > { %v677_v21 = vmax.f32 %v657_v19, 1e-24  ;;  %v1621_v22 = vpop.eup %1620 }
 0x14e   : > { %v783_v23 = vmul.f32 %v1621_v22, %v676_v17  ;;  %vm789_vm2 = vweird.f32 %v1621_v22 }
 0x14f   : > { %1622 = vrsqrt.f32 %v677_v21  ;;  %vm798_vm3 = vweird.f32 %v677_v21  ;;  %vm790_vm6 = vmor %vm788_vm5, %vm789_vm2 }
 0x150   : > { %v784_v25 = vmul.f32 %v1621_v22, %v783_v23 }
 0x152   : > { %v785_v36 = vmul.f32 0.5, %v784_v25 }
 0x154   : > { %v659_v24 = vpop.xlane.xlu1 %658  ;;  %v649_v41 = vpop.xlane.xlu2 %648  ;;  %v786_v45 = vsub.f32 1.5, %v785_v36 }
 0x155   : > { %v1623_v52 = vpop.eup %1622  ;;  %v1983_v28 = vmax.f32 %v659_v24, 1e-24  ;;  %v1985_v37 = vmax.f32 %v649_v41, 1e-24 }
 0x156   : > { %v793_v26 = vmul.f32 %v1623_v52, %v677_v21  ;;  %vm799_vm1 = vweird.f32 %v1623_v52  ;;  %v787_v27 = vmul.f32 %v1621_v22, %v786_v45 }
 0x157   : > { %1624 = vrsqrt.f32 %v1983_v28  ;;  %vm800_vm4 = vmor %vm798_vm3, %vm799_vm1  ;;  %vm808_vm7 = vweird.f32 %v1983_v28  ;;  %vm758_vm9 = vweird.f32 %v1985_v37 }
 0x158   : > { %v794_v35 = vmul.f32 %v1623_v52, %v793_v26  ;;  %1626 = vrsqrt.f32 %v1985_v37  ;;  %v791_v12 = vsel %vm790_vm6, %v1621_v22, %v787_v27 }
 0x159   : > { %v2018_v19 = vmul.f32 %v791_v12, %v1837_v44 }
 0x15a   : > { %v795_v39 = vmul.f32 0.5, %v794_v35 }
 0x15c   : > { %v796_v42 = vsub.f32 1.5, %v795_v39  ;;  %v661_v43 = vpop.xlane.xlu1 %660  ;;  %v643_v47 = vpop.xlane.xlu2 %642 }
 0x15d   : > { %v1989_v48 = vmax.f32 %v661_v43, 1e-24  ;;  %v1992_v50 = vpop.eup %1624  ;;  %v1994_v51 = vmax.f32 %v643_v47, 1e-24 }
 0x15e   : > { %v797_v53 = vmul.f32 %v1623_v52, %v796_v42  ;;  %v1996_v40 = vpop.eup %1626  ;;  %v803_v58 = vmul.f32 %v1992_v50, %v1983_v28  ;;  %vm809_vm8 = vweird.f32 %v1992_v50 }
 0x15f   : > { %1628 = vrsqrt.f32 %v1989_v48  ;;  %v753_v8 = vmul.f32 %v1996_v40, %v1985_v37  ;;  %vm759_vm10 = vweird.f32 %v1996_v40  ;;  %vm818_vm11 = vweird.f32 %v1989_v48  ;;  %vm2065_vm13 = vmor %vm808_vm7, %vm809_vm8 }
 0x160   : > { %1630 = vrsqrt.f32 %v1994_v51  ;;  %v801_v2 = vsel %vm800_vm4, %v1623_v52, %v797_v53  ;;  %v804_v13 = vmul.f32 %v1992_v50, %v803_v58  ;;  %vm728_vm15 = vweird.f32 %v1994_v51  ;;  %vm2105_vm0 = vmor %vm758_vm9, %vm759_vm10 }
 0x161   : > { %v2011_v15 = vmul.f32 %v801_v2, %v1844_v49  ;;  %v754_v23 = vmul.f32 %v1996_v40, %v753_v8 }
 0x162   : > { %v805_v22 = vmul.f32 0.5, %v804_v13 }
 0x163   : > { %v940_v49 = vadd.f32 %v2011_v15, %v2018_v19  ;;  %v755_v39 = vmul.f32 0.5, %v754_v23 }
 0x164   : > { %v663_v59 = vpop.xlane.xlu0 %662  ;;  %v651_v1 = vpop.xlane.xlu1 %650  ;;  %v806_v42 = vsub.f32 1.5, %v805_v22 }
 0x165   : > { %v2001_v32 = vpop.eup %1628  ;;  %v2003_v3 = vmax.f32 %v663_v59, 1e-24  ;;  %v481_v7 = vpop.xlane.xlu2 %480  ;;  %v2015_v17 = vmax.f32 %v651_v1, 1e-24  ;;  %v941_v47 = vrot.slane %v940_v49, 4  ;;  %v756_v1 = vsub.f32 1.5, %v755_v39 }
 0x166   : > { %v813_v11 = vmul.f32 %v2001_v32, %v1989_v48  ;;  %v2020_v21 = vpop.eup %1630  ;;  %v2023_v24 = vmax.f32 %v481_v7, 1e-24  ;;  %v807_v2 = vmul.f32 %v1992_v50, %v806_v42  ;;  %vm819_vm12 = vweird.f32 %v2001_v32 }
 0x167   : > { %1632 = vrsqrt.f32 %v2003_v3  ;;  %v723_v26 = vmul.f32 %v2020_v21, %v1994_v51  ;;  %v942_v7 = vadd.f32 %v941_v47, %v940_v49  ;;  %v757_v42 = vmul.f32 %v1996_v40, %v756_v1  ;;  %vm2085_vm14 = vmor %vm818_vm11, %vm819_vm12 }
 0x168   : > { %v814_v38 = vmul.f32 %v2001_v32, %v813_v11  ;;  %1634 = vrsqrt.f32 %v2015_v17  ;;  %v811_v28 = vsel %vm2065_vm13, %v1992_v50, %v807_v2  ;;  %v1708_v2 = vmov 16.0  }
 0x169   : > { %1636 = vrsqrt.f32 %v2023_v24  ;;  %v724_v53 = vmul.f32 %v2020_v21, %v723_v26  ;;  %v943_v39 = vrot.slane %v942_v7, 2  ;;  %vm729_vm1 = vweird.f32 %v2020_v21 }
 0x16a   : > { %v815_v25 = vmul.f32 0.5, %v814_v38  ;;  %vm828_vm2 = vweird.f32 %v2003_v3  ;;  %v761_v37 = vsel %vm2105_vm0, %v1996_v40, %v757_v42  ;;  %vm2161_vm6 = vmor %vm728_vm15, %vm729_vm1  ;;  %vm768_vm8 = vweird.f32 %v2015_v17 }
 0x16b   : > { %v725_v38 = vmul.f32 0.5, %v724_v53 }
 0x16c   : > { %v665_v41 = vpop.xlane.xlu0 %664  ;;  %v645_v52 = vpop.xlane.xlu1 %644  ;;  %v816_v45 = vsub.f32 1.5, %v815_v25 }
 0x16d   : > { %v2030_v44 = vmax.f32 %v665_v41, 1e-24  ;;  %v635_v35 = vpop.xlane.xlu2 %634  ;;  %v2032_v36 = vpop.eup %1632  ;;  %v2036_v43 = vmax.f32 %v645_v52, 1e-24 }
 0x16e   : > { %v823_v27 = vmul.f32 %v2032_v36, %v2003_v3  ;;  %v2044_v58 = vmax.f32 %v635_v35, 1e-24  ;;  %v2046_v59 = vpop.eup %1634  ;;  %v817_v49 = vmul.f32 %v2001_v32, %v816_v45  ;;  %vm829_vm3 = vweird.f32 %v2032_v36 }
 0x16f   : > { %1638 = vrsqrt.f32 %v2030_v44  ;;  %v2050_v8 = vpop.eup %1636  ;;  %v763_v25 = vmul.f32 %v2046_v59, %v2015_v17  ;;  %vm769_vm5 = vweird.f32 %v2046_v59  ;;  %vm838_vm7 = vweird.f32 %v2030_v44  ;;  %vm2193_vm10 = vmor %vm828_vm2, %vm829_vm3 }
 0x170   : > { %1640 = vrsqrt.f32 %v2036_v43  ;;  %v824_v23 = vmul.f32 %v2032_v36, %v823_v27  ;;  %v519_v45 = vmul.f32 %v2050_v8, %v2023_v24  ;;  %v821_v48 = vsel %vm2085_vm14, %v2001_v32, %v817_v49  ;;  %vm2248_vm1 = vmor %vm768_vm8, %vm769_vm5 }
 0x171   : > { %1642 = vrsqrt.f32 %v2044_v58  ;;  %v2114_v32 = vmul.f32 %v811_v28, %v1854_v56  ;;  %v2116_v49 = vadd.f32 %v943_v39, %v942_v7  ;;  %v2128_v56 = vmul.f32 %v821_v48, %v1866_v0 }
 0x172   : > { %v825_v1 = vmul.f32 0.5, %v824_v23  ;;  %vm738_vm13 = vweird.f32 %v2036_v43  ;;  %vm688_vm14 = vweird.f32 %v2044_v58 }
 0x173   : > { %2838 = vst [vmem:[#allocation11_spill] sm:$0xff] %v2116_v49 }
 0x174   : > { %v653_v11 = vpop.xlane.xlu0 %652  ;;  %v479_v12 = vpop.xlane.xlu1 %478  ;;  %v826_v28 = vsub.f32 1.5, %v825_v1 }
 0x175   : > { %v2055_v13 = vpop.eup %1638  ;;  %v2058_v22 = vmax.f32 %v653_v11, 1e-24  ;;  %v487_v41 = vpop.xlane.xlu2 %486  ;;  %v2093_v27 = vmax.f32 %v479_v12, 1e-24  ;;  %v726_v12 = vsub.f32 1.5, %v725_v38  ;;  %v520_v38 = vmul.f32 %v2050_v8, %v519_v45 }
 0x176   : > { %v833_v26 = vmul.f32 %v2055_v13, %v2030_v44  ;;  %v2074_v35 = vmax.f32 %v487_v41, 1e-24  ;;  %v2095_v50 = vpop.eup %1640  ;;  %v764_v41 = vmul.f32 %v2046_v59, %v763_v25  ;;  %vm839_vm4 = vweird.f32 %v2055_v13 }
 0x177   : > { %1644 = vrsqrt.f32 %v2058_v22  ;;  %v2121_v52 = vpop.eup %1642  ;;  %v733_v25 = vmul.f32 %v2095_v50, %v2036_v43  ;;  %v2143_v0 = vmul.f32 %v2020_v21, %v726_v12  ;;  %vm840_vm9 = vmor %vm838_vm7, %vm839_vm4  ;;  %v2178_v44 = vmul.f32 %v761_v37, %v1851_v54 }
 0x178   : > { %v834_v53 = vmul.f32 %v2055_v13, %v833_v26  ;;  %1646 = vrsqrt.f32 %v2074_v35  ;;  %v683_v1 = vmul.f32 %v2121_v52, %v2044_v58  ;;  %vm739_vm11 = vweird.f32 %v2095_v50 }
 0x179   : > { %1648 = vrcp.f32 %v1708_v2  ;;  %v765_v2 = vmul.f32 0.5, %v764_v41  ;;  %v521_v41 = vmul.f32 0.5, %v520_v38  ;;  %v731_v60 = vsel %vm2161_vm6, %v2020_v21, %v2143_v0  ;;  %vm2294_vm6 = vmor %vm738_vm13, %vm739_vm11 }
 0x17a   : > { %v835_v23 = vmul.f32 0.5, %v834_v53  ;;  %1650 = vrsqrt.f32 %v2093_v27  ;;  %vm778_vm12 = vweird.f32 %v2058_v22  ;;  %vm689_vm15 = vweird.f32 %v2121_v52 }
 0x17b   : > { %v522_v37 = vsub.f32 1.5, %v521_v41  ;;  %vm554_vm0 = vweird.f32 %v2074_v35  ;;  %vm2334_vm13 = vmor %vm688_vm14, %vm689_vm15 }
 0x17c   : > { %v647_v26 = vpop.xlane.xlu0 %646  ;;  %v485_v47 = vpop.xlane.xlu1 %484  ;;  %v836_v39 = vsub.f32 1.5, %v835_v23 }
 0x17d   : > { %v2130_v7 = vpop.eup %1644  ;;  %v2132_v53 = vmax.f32 %v647_v26, 1e-24  ;;  %v493_v40 = vpop.xlane.xlu2 %492  ;;  %v2134_v42 = vmax.f32 %v485_v47, 1e-24  ;;  %v734_v26 = vmul.f32 %v2095_v50, %v733_v25  ;;  %v827_v25 = vmul.f32 %v2032_v36, %v826_v28 }
 0x17e   : > { %v2136_v45 = vpop.eup %1646  ;;  %v773_v11 = vmul.f32 %v2130_v7, %v2058_v22  ;;  %v2140_v49 = vmax.f32 %v493_v40, 1e-24  ;;  %v837_v38 = vmul.f32 %v2055_v13, %v836_v39  ;;  %v766_v39 = vsub.f32 1.5, %v765_v2 }
 0x17f   : > { %v2145_v48 = vpop.eup %1648  ;;  %v549_v23 = vmul.f32 %v2136_v45, %v2074_v35  ;;  %1652 = vrsqrt.f32 %v2132_v53  ;;  %v684_v28 = vmul.f32 %v2121_v52, %v683_v1  ;;  %v831_v41 = vsel %vm2193_vm10, %v2032_v36, %v827_v25 }
 0x180   : > { %2839 = vst [vmem:[#allocation12_spill] sm:$0xff] %v2145_v48  ;;  %v774_v12 = vmul.f32 %v2130_v7, %v773_v11  ;;  %1654 = vrsqrt.f32 %v2140_v49  ;;  %v2169_v40 = vpop.eup %1650  ;;  %v947_v11 = vadd.f32 %v2128_v56, %v2114_v32  ;;  %v2181_v14 = vmul.f32 16.0, %v2145_v48 }
 0x181   : > { %1656 = vrsqrt.f32 %v2134_v42  ;;  %v550_v51 = vmul.f32 %v2136_v45, %v549_v23  ;;  %v841_v5 = vsel %vm840_vm9, %v2055_v13, %v837_v38  ;;  %v735_v23 = vmul.f32 0.5, %v734_v26 }
 0x182   : > { %2842 = vst [vmem:[#allocation13_spill] sm:$0xff] %v2181_v14  ;;  %v775_v2 = vmul.f32 0.5, %v774_v12  ;;  %v2198_v1 = vmul.f32 %v841_v5, %v1894_v20  ;;  %v509_v21 = vmul.f32 %v2169_v40, %v2093_v27  ;;  %v948_v12 = vrot.slane %v947_v11, 4 }
 0x183   : > { %v551_v20 = vmul.f32 0.5, %v550_v51  ;;  %v767_v36 = vmul.f32 %v2046_v59, %v766_v39  ;;  %v2231_v14 = vmul.f32 %v831_v41, %v1879_v10  ;;  %vm779_vm2 = vweird.f32 %v2130_v7 }
 0x184   : > { %v641_v13 = vpop.xlane.xlu0 %640  ;;  %v491_v38 = vpop.xlane.xlu1 %490  ;;  %1022 = vmatpush.xpose.msra.mxu2 %v2198_v1  ;;  %v776_v25 = vsub.f32 1.5, %v775_v2  ;;  %v510_v4 = vmul.f32 %v2169_v40, %v509_v21  ;;  %v2239_v2 = vmul.f32 %v731_v60, %v1863_v62  ;;  %v2254_v41 = vadd.f32 %v948_v12, %v947_v11  ;;  %vm2281_vm5 = vmor %vm778_vm12, %vm779_vm2 }
 0x185   : > { %v2200_v48 = vpop.eup %1652  ;;  %v2205_v3 = vmax.f32 %v641_v13, 1e-24  ;;  %v2207_v0 = vmax.f32 %v491_v38, 1e-24  ;;  %v685_v13 = vmul.f32 0.5, %v684_v28  ;;  %v736_v28 = vsub.f32 1.5, %v735_v23 }
 0x186   : > { %v2212_v26 = vpop.eup %1654  ;;  %v743_v5 = vmul.f32 %v2200_v48, %v2132_v53  ;;  %v552_v39 = vsub.f32 1.5, %v551_v20  ;;  %vm555_vm3 = vweird.f32 %v2136_v45  ;;  %v777_v20 = vmul.f32 %v2130_v7, %v776_v25 }
 0x187   : > { %v2218_v47 = vpop.eup %1656  ;;  %v579_v54 = vmul.f32 %v2212_v26, %v2140_v49  ;;  %1658 = vrsqrt.f32 %v2205_v3  ;;  %v686_v23 = vsub.f32 1.5, %v685_v13  ;;  %v771_v17 = vsel %vm2248_vm1, %v2046_v59, %v767_v36  ;;  %vm2311_vm8 = vmor %vm554_vm0, %vm555_vm3 }
 0x188   : > { %v744_v51 = vmul.f32 %v2200_v48, %v743_v5  ;;  %v539_v38 = vmul.f32 %v2218_v47, %v2134_v42  ;;  %1660 = vrsqrt.f32 %v2207_v0  ;;  %1023 = vmatpush.xpose.msra.mxu2 %v2231_v14  ;;  %v2242_v5 = vmul.f32 %v2050_v8, %v522_v37 }
 0x189   : > { %v580_v16 = vmul.f32 %v2212_v26, %v579_v54  ;;  %v2263_v13 = vmul.f32 0.5, %v510_v4  ;;  %v737_v11 = vmul.f32 %v2095_v50, %v736_v28  ;;  %v553_v12 = vmul.f32 %v2136_v45, %v552_v39 }
 0x18a   : > { %v540_v21 = vmul.f32 %v2218_v47, %v539_v38  ;;  %v745_v62 = vmul.f32 0.5, %v744_v51  ;;  %vm748_vm4 = vweird.f32 %v2132_v53  ;;  %v2288_v28 = vmul.f32 %v771_v17, %v1874_v6 }
 0x18b   : > { %v581_v51 = vmul.f32 0.5, %v580_v16  ;;  %vm584_vm7 = vweird.f32 %v2140_v49  ;;  %v2305_v6 = vmul.f32 %v2121_v52, %v686_v23  ;;  %vm544_vm9 = vweird.f32 %v2134_v42 }
 0x18c   : > { %v483_v60 = vpop.xlane.xlu0 %482  ;;  %v639_v37 = vpop.xlane.xlu1 %638  ;;  %1024 = vmatpush.xpose.msra.mxu2 %v2128_v56  ;;  %v541_v36 = vmul.f32 0.5, %v540_v21  ;;  %v746_v22 = vsub.f32 1.5, %v745_v62  ;;  %v781_v21 = vsel %vm2281_vm5, %v2130_v7, %v777_v20  ;;  %v512_v62 = vsub.f32 1.5, %v2263_v13 }
 0x18d   : > { %v2261_v54 = vpop.eup %1658  ;;  %v2265_v9 = vmax.f32 %v483_v60, 1e-24  ;;  %v2267_v38 = vmax.f32 %v639_v37, 1e-24  ;;  %v741_v7 = vsel %vm2294_vm6, %v2095_v50, %v737_v11  ;;  %vm525_vm10 = vweird.f32 %v2050_v8 }
 0x18e   : > { %v713_v25 = vmul.f32 %v2261_v54, %v2205_v3  ;;  %v2275_v59 = vpop.eup %1660  ;;  %v557_v35 = vsel %vm2311_vm8, %v2136_v45, %v553_v12  ;;  %vm749_vm11 = vweird.f32 %v2200_v48  ;;  %v582_v23 = vsub.f32 1.5, %v581_v51 }
 0x18f   : > { %1662 = vrsqrt.f32 %v2265_v9  ;;  %v569_v10 = vmul.f32 %v2275_v59, %v2207_v0  ;;  %vm524_vm12 = vweird.f32 %v2023_v24  ;;  %vm585_vm0 = vweird.f32 %v2212_v26  ;;  %vm2376_vm15 = vmor %vm748_vm4, %vm749_vm11 }
 0x190   : > { %v714_v60 = vmul.f32 %v2261_v54, %v713_v25  ;;  %1664 = vrsqrt.f32 %v2267_v38  ;;  %1025 = vmatpush.xpose.msra.mxu2 %v2114_v32  ;;  %v542_v45 = vsub.f32 1.5, %v541_v36  ;;  %v2341_v20 = vadd.f32 %v2198_v1, %v2231_v14  ;;  %vm2396_vm4 = vmor %vm584_vm7, %vm585_vm0 }
 0x191   : > { %v570_v37 = vmul.f32 %v2275_v59, %v569_v10  ;;  %v2344_v17 = vmul.f32 %v781_v21, %v1909_v30  ;;  %vm545_vm1 = vweird.f32 %v2218_v47  ;;  %vm718_vm2 = vweird.f32 %v2205_v3  ;;  %vm2431_vm0 = vmor %vm524_vm12, %vm525_vm10 }
 0x192   : > { %v747_v51 = vmul.f32 %v2200_v48, %v746_v22  ;;  %v2352_v4 = vmul.f32 %v557_v35, %v1911_v31  ;;  %v715_v36 = vmul.f32 0.5, %v714_v60  ;;  %vm574_vm14 = vweird.f32 %v2207_v0  ;;  %vm2410_vm11 = vmor %vm544_vm9, %vm545_vm1 }
 0x193   : > { %v571_v11 = vmul.f32 0.5, %v570_v37  ;;  %v583_v10 = vmul.f32 %v2212_v26, %v582_v23  ;;  %v2364_v22 = vmul.f32 %v741_v7, %v1891_v18  ;;  %v691_v31 = vsel %vm2334_vm13, %v2121_v52, %v2305_v6 }
 0x194   : > { %v637_v58 = vpop.xlane.xlu0 %636  ;;  %v497_v12 = vpop.xlane.xlu1 %496  ;;  %1026 = vmatpush.xpose.msra.mxu2 %v2011_v15  ;;  %v543_v35 = vmul.f32 %v2218_v47, %v542_v45  ;;  %vm719_vm3 = vweird.f32 %v2261_v54  ;;  %v933_v18 = vadd.f32 %v2344_v17, %v2288_v28  ;;  %vm514_vm5 = vweird.f32 %v2093_v27 }
 0x195   : > { %v2349_v25 = vpop.eup %1662  ;;  %v2355_v39 = vmax.f32 %v637_v58, 1e-24  ;;  %v2357_v30 = vmax.f32 %v497_v12, 1e-24  ;;  %v572_v7 = vsub.f32 1.5, %v571_v11  ;;  %v751_v37 = vsel %vm2376_vm15, %v2200_v48, %v747_v51  ;;  %vm2441_vm1 = vmor %vm718_vm2, %vm719_vm3 }
 0x196   : > { %v529_v21 = vmul.f32 %v2349_v25, %v2265_v9  ;;  %v2370_v43 = vpop.eup %1664  ;;  %v716_v58 = vsub.f32 1.5, %v715_v36  ;;  %vm534_vm6 = vweird.f32 %v2265_v9  ;;  %vm708_vm8 = vweird.f32 %v2267_v38 }
 0x197   : > { %1666 = vrsqrt.f32 %v2355_v39  ;;  %v703_v53 = vmul.f32 %v2370_v43, %v2267_v38  ;;  %v587_v11 = vsel %vm2396_vm4, %v2212_v26, %v583_v10  ;;  %vm575_vm7 = vweird.f32 %v2275_v59 }
 0x198   : > { %v530_v23 = vmul.f32 %v2349_v25, %v529_v21  ;;  %1668 = vrsqrt.f32 %v2357_v30  ;;  %1027 = vmatpush.xpose.msra.mxu2 %v2018_v19  ;;  %v547_v51 = vsel %vm2410_vm11, %v2218_v47, %v543_v35  ;;  %v934_v26 = vrot.slane %v933_v18, 4  ;;  %vm2456_vm10 = vmor %vm574_vm14, %vm575_vm7 }
 0x199   : > { %v704_v12 = vmul.f32 %v2370_v43, %v703_v53  ;;  %v2421_v36 = vmul.f32 %v751_v37, %v1925_v33  ;;  %v919_v42 = vadd.f32 %v2364_v22, %v2239_v2  ;;  %v573_v10 = vmul.f32 %v2275_v59, %v572_v7 }
 0x19a   : > { %v531_v48 = vmul.f32 0.5, %v530_v23  ;;  %vm535_vm9 = vweird.f32 %v2349_v25  ;;  %vm709_vm15 = vweird.f32 %v2370_v43  ;;  %v717_v24 = vmul.f32 %v2261_v54, %v716_v58 }
 0x19b   : > { %v705_v60 = vmul.f32 0.5, %v704_v12  ;;  %v513_v53 = vmul.f32 %v2169_v40, %v512_v62  ;;  %vm515_vm12 = vweird.f32 %v2169_v40  ;;  %v2468_v62 = vmul.f32 %v587_v11, %v1929_v34  ;;  %vm536_vm2 = vmor %vm534_vm6, %vm535_vm9 }
 0x19c   : > { %v532_v21 = vsub.f32 1.5, %v531_v48  ;;  %v489_v23 = vpop.xlane.xlu0 %488  ;;  %1028 = vmatpush.xpose.msra.mxu2 %v2344_v17  ;;  %v2471_v0 = vmul.f32 %v547_v51, %v1927_v46  ;;  %v926_v58 = vadd.f32 %v2178_v44, %v2421_v36  ;;  %v577_v48 = vsel %vm2456_vm10, %v2275_v59, %v573_v10  ;;  %vm2488_vm14 = vmor %vm708_vm8, %vm709_vm15 }
 0x19d   : > { %v2435_v33 = vpop.eup %1666  ;;  %v2446_v7 = vmax.f32 %v489_v23, 1e-24  ;;  %v706_v45 = vsub.f32 1.5, %v705_v60  ;;  %v935_v11 = vadd.f32 %v934_v26, %v933_v18  ;;  %v920_v51 = vrot.slane %v919_v42, 4  ;;  %vm516_vm3 = vmor %vm514_vm5, %vm515_vm12 }
 0x19e   : > { %v533_v37 = vmul.f32 %v2349_v25, %v532_v21  ;;  %v693_v49 = vmul.f32 %v2435_v33, %v2355_v39  ;;  %v2465_v13 = vpop.eup %1668  ;;  %v721_v59 = vsel %vm2441_vm1, %v2261_v54, %v717_v24  ;;  %v527_v38 = vsel %vm2431_vm0, %v2050_v8, %v2242_v5 }
 0x19f   : > { %1670 = vrsqrt.f32 %v2446_v7  ;;  %v599_v12 = vmul.f32 %v2465_v13, %v2357_v30  ;;  %v707_v26 = vmul.f32 %v2370_v43, %v706_v45  ;;  %v517_v54 = vsel %vm516_vm3, %v2169_v40, %v513_v53 }
 0x1a0   : > { %v537_v34 = vsel %vm536_vm2, %v2349_v25, %v533_v37  ;;  %v694_v9 = vmul.f32 %v2435_v33, %v693_v49  ;;  %1029 = vmatpush.xpose.msra.mxu2 %v2288_v28  ;;  %v2513_v10 = vmul.f32 %v577_v48, %v1943_v57  ;;  %vm698_vm5 = vweird.f32 %v2355_v39 }
 0x1a1   : > { %v2507_v25 = vmul.f32 %v537_v34, %v1954_v63  ;;  %v927_v27 = vrot.slane %v926_v58, 4  ;;  %v2517_v21 = vmul.f32 %v517_v54, %v1907_v29  ;;  %vm699_vm4 = vweird.f32 %v2435_v33  ;;  %v2869_v29 = vld [vmem:[#allocation5_spill] sm:$0xff]  ;;  %v2870_v34 = vld [vmem:[#allocation6_spill] sm:$0xff] }
 0x1a2   : > { %v695_v18 = vmul.f32 0.5, %v694_v9  ;;  %v2521_v5 = vmul.f32 %v721_v59, %v1941_v55  ;;  %v711_v40 = vsel %vm2488_vm14, %v2370_v43, %v707_v26  ;;  %v600_v57 = vmul.f32 %v2465_v13, %v599_v12  ;;  %vm700_vm6 = vmor %vm698_vm5, %vm699_vm4  ;;  %v2871_v12 = vld [vmem:[#allocation7_spill] sm:$0xff]  ;;  %v2872_v54 = vld [vmem:[#allocation13_spill] sm:$0xff] }
 0x1a3   : > { %v2530_v47 = vmul.f32 %v711_v40, %v1952_v61  ;;  %v2533_v35 = vmul.f32 %v527_v38, %v2869_v29  ;;  %v865_v24 = vadd.f32 %v2471_v0, %v2507_v25  ;;  %v936_v53 = vrot.slane %v935_v11, 2 }
 0x1a4   : > { %v696_v8 = vsub.f32 1.5, %v695_v18  ;;  %v495_v63 = vpop.xlane.xlu0 %494  ;;  %1030 = vmatpush.xpose.msra.mxu2 %v2178_v44  ;;  %v921_v61 = vadd.f32 %v920_v51, %v919_v42  ;;  %v928_v49 = vadd.f32 %v927_v27, %v926_v58  ;;  %v2554_v39 = vmul.f32 %v691_v31, %v2870_v34 }
 0x1a5   : > { %v1671_v60 = vpop.eup %1670  ;;  %v2527_v23 = vmax.f32 %v495_v63, 1e-24  ;;  %v912_v3 = vadd.f32 %v2521_v5, %v2530_v47  ;;  %v858_v37 = vadd.f32 %v2533_v35, %v2517_v21  ;;  %v879_v42 = vadd.f32 %v2468_v62, %v2513_v10 }
 0x1a6   : > { %v559_v55 = vmul.f32 %v1671_v60, %v2446_v7  ;;  %v697_v43 = vmul.f32 %v2435_v33, %v696_v8  ;;  %v601_v46 = vmul.f32 0.5, %v600_v57  ;;  %v955_v58 = vrot.slane %v2341_v20, 4 }
 0x1a7   : > { %1672 = vrsqrt.f32 %v2527_v23  ;;  %v913_v9 = vrot.slane %v912_v3, 4  ;;  %v866_v59 = vrot.slane %v865_v24, 4  ;;  %v2562_v38 = vadd.f32 %v936_v53, %v935_v11 }
 0x1a8   : > { %v560_v45 = vmul.f32 %v1671_v60, %v559_v55  ;;  %v701_v48 = vsel %vm700_vm6, %v2435_v33, %v697_v43  ;;  %1031 = vmatpush.xpose.msra.mxu2 %v2421_v36  ;;  %vm604_vm13 = vweird.f32 %v2357_v30  ;;  %v922_v52 = vrot.slane %v921_v61, 2 }
 0x1a9   : > { %v2559_v51 = vmul.f32 %v701_v48, %v2871_v12  ;;  %v914_v6 = vadd.f32 %v913_v9, %v912_v3  ;;  %v859_v31 = vrot.slane %v858_v37, 4  ;;  %vm565_vm8 = vweird.f32 %v1671_v60 }
 0x1aa   : > { %v561_v33 = vmul.f32 0.5, %v560_v45  ;;  %v929_v26 = vrot.slane %v928_v49, 2  ;;  %v895_v27 = vsub.f32 1.0, %v2872_v54  ;;  %v880_v63 = vrot.slane %v879_v42, 4 }
 0x1ab   : > { %v905_v50 = vadd.f32 %v2559_v51, %v2554_v39  ;;  %v602_v40 = vsub.f32 1.5, %v601_v46  ;;  %v915_v11 = vrot.slane %v914_v6, 2  ;;  %v867_v29 = vadd.f32 %v866_v59, %v865_v24  ;;  %v2874_v24 = vld [vmem:[#allocation9_spill] sm:$0xff] }
 0x1ac   : > { %v562_v18 = vsub.f32 1.5, %v561_v33  ;;  %vm564_vm11 = vweird.f32 %v2446_v7  ;;  %1032 = vmatpush.xpose.msra.mxu2 %v2364_v22  ;;  %v923_v43 = vadd.f32 %v922_v52, %v921_v61  ;;  %v860_v48 = vadd.f32 %v859_v31, %v858_v37  ;;  %v2873_v33 = vld [vmem:[#allocation12_spill] sm:$0xff] }
 0x1ad   : > { %v1673_v8 = vpop.eup %1672  ;;  %v906_v57 = vrot.slane %v905_v50, 4  ;;  %vm566_vm7 = vmor %vm564_vm11, %vm565_vm8  ;;  %v916_v3 = vadd.f32 %v915_v11, %v914_v6  ;;  %v930_v12 = vadd.f32 %v929_v26, %v928_v49  ;;  %v896_v46 = vmul.f32 %v2873_v33, %v895_v27 }
 0x1ae   : > { %v563_v55 = vmul.f32 %v1671_v60, %v562_v18  ;;  %v589_v53 = vmul.f32 %v1673_v8, %v2527_v23  ;;  %v603_v54 = vmul.f32 %v2465_v13, %v602_v40  ;;  %vm605_vm9 = vweird.f32 %v2465_v13 }
 0x1af   : > { %v907_v45 = vadd.f32 %v906_v57, %v905_v50  ;;  %v868_v18 = vrot.slane %v867_v29, 2  ;;  %v917_v61 = vrot.slane %v916_v3, 1  ;;  %v881_v52 = vadd.f32 %v880_v63, %v879_v42  ;;  %vm2583_vm0 = vmor %vm604_vm13, %vm605_vm9 }
 0x1b0   : > { %v567_v34 = vsel %vm566_vm7, %v1671_v60, %v563_v55  ;;  %v590_v9 = vmul.f32 %v1673_v8, %v589_v53  ;;  %1033 = vmatpush.xpose.msra.mxu2 %v2239_v2  ;;  %v924_v37 = vrot.slane %v923_v43, 1  ;;  %v861_v6 = vrot.slane %v860_v48, 2 }
 0x1b1   : > { %v2576_v7 = vmul.f32 %v567_v34, %v2874_v24  ;;  %v908_v59 = vrot.slane %v907_v45, 2  ;;  %vm594_vm1 = vweird.f32 %v2527_v23  ;;  %vm595_vm15 = vweird.f32 %v1673_v8  ;;  %v2878_v24 = vld [vmem:[#allocation10_spill] sm:$0xff] }
 0x1b2   : > { %v591_v16 = vmul.f32 0.5, %v590_v9  ;;  %v897_v26 = vadd.f32 %v2873_v33, %v896_v46  ;;  %v607_v42 = vsel %vm2583_vm0, %v2465_v13, %v603_v54  ;;  %vm898_vm10 = vweird.f32 %v2873_v33  ;;  %vm596_vm12 = vmor %vm594_vm1, %vm595_vm15  ;;  %v2877_v46 = vld [vmem:[#allocation8_spill] sm:$0xff] }
 0x1b3   : > { %v872_v60 = vadd.f32 %v2576_v7, %v2352_v4  ;;  %v909_v49 = vadd.f32 %v908_v59, %v907_v45  ;;  %v918_v30 = vadd.f32 %v917_v61, %v916_v3  ;;  %v869_v11 = vadd.f32 %v868_v18, %v867_v29 }
 0x1b4   : > { %v592_v31 = vsub.f32 1.5, %v591_v16  ;;  %1034 = vmatpush.xpose.msra.mxu2 %v2521_v5  ;;  %v882_v57 = vrot.slane %v881_v52, 2  ;;  %v956_v16 = vadd.f32 %v955_v58, %v2341_v20  ;;  %v862_v53 = vadd.f32 %v861_v6, %v860_v48 }
 0x1b5   : > { %v873_v27 = vrot.slane %v872_v60, 4  ;;  %v910_v63 = vrot.slane %v909_v49, 1  ;;  %v931_v34 = vrot.slane %v930_v12, 1  ;;  %v925_v9 = vadd.f32 %v924_v37, %v923_v43 }
 0x1b6   : > { %v593_v40 = vmul.f32 %v1673_v8, %v592_v31  ;;  %v2596_v13 = vsel %vm898_vm10, %v2873_v33, %v897_v26  ;;  %v2599_v54 = vmul.f32 %v607_v42, %v2877_v46  ;;  %v870_v20 = vrot.slane %v869_v11, 1 }
 0x1b7   : > { %v874_v23 = vadd.f32 %v873_v27, %v872_v60  ;;  %v911_v55 = vadd.f32 %v910_v63, %v909_v49  ;;  %v883_v58 = vadd.f32 %v882_v57, %v881_v52  ;;  %v962_v43 = vmul.f32 %v918_v30, %v2596_v13  ;;  %v2880_v27 = vld [vmem:[#allocation11_spill] sm:$0xff] }
 0x1b8   : > { %v597_v45 = vsel %vm596_vm12, %v1673_v8, %v593_v40  ;;  %1035 = vmatpush.xpose.msra.mxu2 %v2530_v47  ;;  %v938_v8 = vrot.slane %v2562_v38, 1  ;;  %v863_v33 = vrot.slane %v862_v53, 1  ;;  %vm977_vm2 = vcmask 1041409  }
 0x1b9   : > { %v2602_v59 = vmul.f32 %v597_v45, %v2878_v24  ;;  %v875_v29 = vrot.slane %v874_v23, 2  ;;  %v961_v3 = vmul.f32 %v911_v55, %v2596_v13  ;;  %v932_v61 = vadd.f32 %v931_v34, %v930_v12 }
 0x1ba   : > { %vm979_vm14 = vcmask 1042434   ;;  %v957_v37 = vrot.slane %v956_v16, 2  ;;  %v963_v50 = vmul.f32 %v925_v9, %v2596_v13  ;;  %v2879_v52 = vrot.slane %v2254_v41, 2 }
 0x1bb   : > { %v886_v48 = vadd.f32 %v2599_v54, %v2602_v59  ;;  %v876_v18 = vadd.f32 %v875_v29, %v874_v23  ;;  %v978_v60 = vsel %vm977_vm2, %v962_v43, %v961_v3  ;;  %v871_v26 = vadd.f32 %v870_v20, %v869_v11 }
 0x1bc   : > { %v951_v31 = vadd.f32 %v2879_v52, %v2254_v41  ;;  %1036 = vmatpush.xpose.msra.mxu2 %v2559_v51  ;;  %v939_v42 = vadd.f32 %v938_v8, %v2562_v38  ;;  %v945_v63 = vrot.slane %v2880_v27, 1  ;;  %v980_v30 = vsel %vm979_vm14, %v963_v50, %v978_v60 }
 0x1bd   : > { %v877_v49 = vrot.slane %v876_v18, 1  ;;  %v887_v6 = vrot.slane %v886_v48, 4  ;;  %vm981_vm3 = vcmask 1043459   ;;  %v864_v57 = vadd.f32 %v863_v33, %v862_v53 }
 0x1be   : > { %v884_v23 = vrot.slane %v883_v58, 1  ;;  %v964_v55 = vmul.f32 %v932_v61, %v2596_v13  ;;  %v958_v45 = vadd.f32 %v957_v37, %v956_v16  ;;  %v952_v9 = vrot.slane %v951_v31, 1 }
 0x1bf   : > { %v878_v12 = vadd.f32 %v877_v49, %v876_v18  ;;  %v888_v40 = vadd.f32 %v887_v6, %v886_v48  ;;  %v901_v41 = vmul.f32 %v2596_v13, %v871_v26  ;;  %vm983_vm5 = vcmask 1044484  }
 0x1c0   : > { %1037 = vmatpush.xpose.msra.mxu2 %v2554_v39  ;;  %v982_v38 = vsel %vm981_vm3, %v964_v55, %v980_v30  ;;  %v946_v11 = vadd.f32 %v945_v63, %v2880_v27  ;;  %v965_v53 = vmul.f32 %v939_v42, %v2596_v13  ;;  %v885_v29 = vadd.f32 %v884_v23, %v883_v58 }
 0x1c1   : > { %v889_v34 = vrot.slane %v888_v40, 2  ;;  %v902_v24 = vmul.f32 %v2596_v13, %v878_v12  ;;  %v900_v3 = vmul.f32 %v2596_v13, %v864_v57  ;;  %v959_v16 = vrot.slane %v958_v45, 1 }
 0x1c2   : > { %v984_v8 = vsel %vm983_vm5, %v965_v53, %v982_v38  ;;  %v953_v43 = vadd.f32 %v952_v9, %v951_v31  ;;  %vm985_vm4 = vcmask 1045509   ;;  %v966_v33 = vmul.f32 %v946_v11, %v2596_v13 }
 0x1c3   : > { %v890_v46 = vadd.f32 %v889_v34, %v888_v40  ;;  %1038 = vmatmul.f32.vlgmr.msra.gmra.mxu2 %v2517_v21  ;;  %v997_v48 = vsel %vm977_vm2, %v901_v41, %v900_v3  ;;  %v903_v60 = vmul.f32 %v2596_v13, %v885_v29  ;;  %v960_v58 = vadd.f32 %v959_v16, %v958_v45 }
 0x1c4   : > { %v998_v61 = vsel %vm979_vm14, %v902_v24, %v997_v48  ;;  %v986_v37 = vsel %vm985_vm4, %v966_v33, %v984_v8  ;;  %vm987_vm6 = vcmask 1046534   ;;  %v967_v21 = vmul.f32 %v953_v43, %v2596_v13 }
 0x1c5   : > { %v891_v20 = vrot.slane %v890_v46, 1  ;;  %v999_v6 = vsel %vm981_vm3, %v903_v60, %v998_v61  ;;  %vm989_vm13 = vcmask 1047559   ;;  %v968_v31 = vmul.f32 %v960_v58, %v2596_v13 }
 0x1c6   : > { %v988_v52 = vsel %vm987_vm6, %v967_v21, %v986_v37 }
 0x1c7   : > { %v892_v18 = vadd.f32 %v891_v20, %v890_v46  ;;  %v990_v26 = vsel %vm989_vm13, %v968_v31, %v988_v52 }
 0x1c9   : > { %v904_v49 = vmul.f32 %v2596_v13, %v892_v18 }
 0x1cb   : > { %v1000_v50 = vsel %vm983_vm5, %v904_v49, %v999_v6  ;;  %1041 = vmatmul.f32.gmra.mxu2 %v2533_v35 }
 0x1cc   : > { %1017 = vmatpush.xpose.msra.mxu3 %v1000_v50 }
 0x1cf   : > { %1018 = vmatmul.f32.vlgmr.msra.gmra.mxu3 %v990_v26 }
 0x1d0   : > { %1580 = vmatpush.xpose.msrb.mxu3 %v2198_v1 }
 0x1d3   : > { %1044 = vmatmul.f32.gmra.mxu2 %v2507_v25 }
 0x1d4   : > { %1581 = vmatpush.xpose.msrb.mxu3 %v2231_v14 }
 0x1d8   : > { %1582 = vmatpush.xpose.msrb.mxu3 %v2128_v56 }
 0x1db   : > { %1047 = vmatmul.f32.gmra.mxu2 %v2471_v0 }
 0x1dc   : > { %1583 = vmatpush.xpose.msrb.mxu3 %v2114_v32 }
 0x1e0   : > { %1584 = vmatpush.xpose.msrb.mxu3 %v2011_v15 }
 0x1e3   : > { %1050 = vmatmul.f32.gmra.mxu2 %v2352_v4 }
 0x1e4   : > { %1585 = vmatpush.xpose.msrb.mxu3 %v2018_v19 }
 0x1e8   : > { %1586 = vmatpush.xpose.msrb.mxu3 %v2344_v17 }
 0x1eb   : > { %1053 = vmatmul.f32.gmra.mxu2 %v2576_v7 }
 0x1ec   : > { %1587 = vmatpush.xpose.msrb.mxu3 %v2288_v28 }
 0x1f0   : > { %1588 = vmatpush.xpose.msrb.mxu3 %v2178_v44 }
 0x1f4   : > { %1589 = vmatpush.xpose.msrb.mxu3 %v2421_v36 }
 0x1f8   : > { %1590 = vmatpush.xpose.msrb.mxu3 %v2364_v22 }
 0x1fc   : > { %1591 = vmatpush.xpose.msrb.mxu3 %v2239_v2 }
 0x200   : > { %1592 = vmatpush.xpose.msrb.mxu3 %v2521_v5 }
 0x204   : > { %1593 = vmatpush.xpose.msrb.mxu3 %v2530_v47 }
 0x208   : > { %1594 = vmatpush.xpose.msrb.mxu3 %v2559_v51 }
 0x20c   : > { %1595 = vmatpush.xpose.msrb.mxu3 %v2554_v39 }
 0x20f   : > { %1056 = vmatmul.f32.vlgmr.msrb.gmra.mxu3 %v2513_v10 }
 0x217   : > { %1059 = vmatmul.f32.gmra.mxu3 %v2468_v62 }
 0x21f   : > { %1062 = vmatmul.f32.gmra.mxu3 %v2602_v59 }
 0x227   : > { %1065 = vmatmul.f32.gmra.mxu3 %v2599_v54 }
 0x246   : > { %v1039_v14 = vpop.f32.mrf.mxu2 }
 0x24e   : > { %v1042_v15 = vpop.f32.mrf.mxu2 }
 0x24f   : > { %v1069_v19 = vmax.f32 %v1039_v14, %v1042_v15 }
 0x251   : > { %v1070_v32 = vrot.slane %v1069_v19, 4 }
 0x252   : > { %v2675_v43 = vpop.f32.mrf.mxu3 }
 0x253   : > { %v1071_v44 = vmax.f32 %v1069_v19, %v1070_v32 }
 0x255   : > { %v1072_v1 = vrot.slane %v1071_v44, 2 }
 0x256   : > { %v1045_v56 = vpop.f32.mrf.mxu2 }
 0x257   : > { %v1073_v17 = vmax.f32 %v1071_v44, %v1072_v1 }
 0x259   : > { %v1074_v36 = vrot.slane %v1073_v17, 1 }
 0x25b   : > { %v2663_v10 = vmax.f32 %v1073_v17, %v1074_v36 }
 0x25d   : > { %vm1109_vm8 = vcmp.ge.f32.partialorder %v1039_v14, %v2663_v10  ;;  %vm1110_vm11 = vcmp.ge.f32.partialorder %v1042_v15, %v2663_v10 }
 0x25e   : > { %v1048_v2 = vpop.f32.mrf.mxu2  ;;  %v1119_v13 = vsel %vm1109_vm8, -inf, %v1039_v14  ;;  %v1120_v54 = vsel %vm1110_vm11, -inf, %v1042_v15 }
 0x25f   : > { %v1076_v28 = vmax.f32 %v1045_v56, %v1048_v2  ;;  %v1129_v27 = vmax.f32 %v1119_v13, %v1120_v54 }
 0x261   : > { %v1077_v4 = vrot.slane %v1076_v28, 4  ;;  %v1130_v30 = vrot.slane %v1129_v27, 4 }
 0x263   : > { %v1078_v22 = vmax.f32 %v1076_v28, %v1077_v4  ;;  %v1131_v45 = vmax.f32 %v1129_v27, %v1130_v30 }
 0x265   : > { %v1079_v0 = vrot.slane %v1078_v22, 2  ;;  %v1132_v38 = vrot.slane %v1131_v45, 2 }
 0x266   : > { %v1051_v25 = vpop.f32.mrf.mxu2 }
 0x267   : > { %v1080_v62 = vmax.f32 %v1078_v22, %v1079_v0  ;;  %v1133_v53 = vmax.f32 %v1131_v45, %v1132_v38 }
 0x269   : > { %v1081_v5 = vrot.slane %v1080_v62, 1  ;;  %v1134_v20 = vrot.slane %v1133_v53, 1 }
 0x26b   : > { %v2665_v47 = vmax.f32 %v1080_v62, %v1081_v5  ;;  %v2679_v18 = vmax.f32 %v1133_v53, %v1134_v20 }
 0x26d   : > { %vm1111_vm7 = vcmp.ge.f32.partialorder %v1045_v56, %v2665_v47  ;;  %vm1112_vm9 = vcmp.ge.f32.partialorder %v1048_v2, %v2665_v47  ;;  %vm1169_vm12 = vcmp.ge.f32.partialorder %v1119_v13, %v2679_v18  ;;  %vm1170_vm4 = vcmp.ge.f32.partialorder %v1120_v54, %v2679_v18 }
 0x26e   : > { %v1121_v35 = vsel %vm1111_vm7, -inf, %v1045_v56  ;;  %v1054_v39 = vpop.f32.mrf.mxu2  ;;  %v1122_v51 = vsel %vm1112_vm9, -inf, %v1048_v2  ;;  %v1179_v50 = vsel %vm1169_vm12, -inf, %v1119_v13  ;;  %v1180_v52 = vsel %vm1170_vm4, -inf, %v1120_v54 }
 0x26f   : > { %v1083_v7 = vmax.f32 %v1051_v25, %v1054_v39  ;;  %v1136_v59 = vmax.f32 %v1121_v35, %v1122_v51  ;;  %v1189_v14 = vmax.f32 %v1179_v50, %v1180_v52 }
 0x271   : > { %v1084_v42 = vrot.slane %v1083_v7, 4  ;;  %v1137_v12 = vrot.slane %v1136_v59, 4  ;;  %v1190_v56 = vrot.slane %v1189_v14, 4 }
 0x273   : > { %v1085_v63 = vmax.f32 %v1083_v7, %v1084_v42  ;;  %v1138_v23 = vmax.f32 %v1136_v59, %v1137_v12  ;;  %v1191_v17 = vmax.f32 %v1189_v14, %v1190_v56 }
 0x275   : > { %v1086_v40 = vrot.slane %v1085_v63, 2  ;;  %v1139_v9 = vrot.slane %v1138_v23, 2  ;;  %v1192_v62 = vrot.slane %v1191_v17, 2 }
 0x277   : > { %v1087_v57 = vmax.f32 %v1085_v63, %v1086_v40  ;;  %v1140_v46 = vmax.f32 %v1138_v23, %v1139_v9  ;;  %v1193_v7 = vmax.f32 %v1191_v17, %v1192_v62 }
 0x279   : > { %v1088_v55 = vrot.slane %v1087_v57, 1  ;;  %v1141_v3 = vrot.slane %v1140_v46, 1  ;;  %v1194_v12 = vrot.slane %v1193_v7, 1 }
 0x27b   : > { %v2671_v34 = vmax.f32 %v1087_v57, %v1088_v55  ;;  %v2677_v48 = vmax.f32 %v1140_v46, %v1141_v3  ;;  %v2697_v9 = vmax.f32 %v1193_v7, %v1194_v12 }
 0x27d   : > { %vm1113_vm0 = vcmp.ge.f32.partialorder %v1051_v25, %v2671_v34  ;;  %vm1114_vm1 = vcmp.ge.f32.partialorder %v1054_v39, %v2671_v34  ;;  %vm1171_vm15 = vcmp.ge.f32.partialorder %v1121_v35, %v2677_v48  ;;  %vm1172_vm10 = vcmp.ge.f32.partialorder %v1122_v51, %v2677_v48 }
 0x27e   : > { %v1123_v41 = vsel %vm1113_vm0, -inf, %v1051_v25  ;;  %v1124_v11 = vsel %vm1114_vm1, -inf, %v1054_v39  ;;  %v1181_v58 = vsel %vm1171_vm15, -inf, %v1121_v35  ;;  %v1182_v37 = vsel %vm1172_vm10, -inf, %v1122_v51 }
 0x27f   : > { %v1143_v24 = vmax.f32 %v1123_v41, %v1124_v11  ;;  %v1196_v31 = vmax.f32 %v1181_v58, %v1182_v37  ;;  %vm1229_vm15 = vcmp.ge.f32.partialorder %v1179_v50, %v2697_v9  ;;  %vm1230_vm10 = vcmp.ge.f32.partialorder %v1180_v52, %v2697_v9 }
 0x281   : > { %v1144_v29 = vrot.slane %v1143_v24, 4  ;;  %v1197_v15 = vrot.slane %v1196_v31, 4 }
 0x283   : > { %v1145_v16 = vmax.f32 %v1143_v24, %v1144_v29  ;;  %v1198_v1 = vmax.f32 %v1196_v31, %v1197_v15 }
 0x285   : > { %v1146_v8 = vrot.slane %v1145_v16, 2  ;;  %v1199_v22 = vrot.slane %v1198_v1, 2 }
 0x287   : > { %v1147_v33 = vmax.f32 %v1145_v16, %v1146_v8  ;;  %v1200_v35 = vmax.f32 %v1198_v1, %v1199_v22 }
 0x289   : > { %v1148_v61 = vrot.slane %v1147_v33, 1  ;;  %v1201_v54 = vrot.slane %v1200_v35, 1 }
 0x28b   : > { %v2683_v60 = vmax.f32 %v1147_v33, %v1148_v61  ;;  %v2693_v57 = vmax.f32 %v1200_v35, %v1201_v54  ;;  %v2713_v61 = vsel %vm1229_vm15, -inf, %v1179_v50 }
 0x28d   : > { %vm1173_vm6 = vcmp.ge.f32.partialorder %v1123_v41, %v2683_v60  ;;  %vm1174_vm13 = vcmp.ge.f32.partialorder %v1124_v11, %v2683_v60  ;;  %vm1231_vm7 = vcmp.ge.f32.partialorder %v1181_v58, %v2693_v57  ;;  %vm1232_vm9 = vcmp.ge.f32.partialorder %v1182_v37, %v2693_v57 }
 0x28e   : > { %v1183_v21 = vsel %vm1173_vm6, -inf, %v1123_v41  ;;  %v1184_v6 = vsel %vm1174_vm13, -inf, %v1124_v11  ;;  %v2705_v29 = vsel %vm1231_vm7, -inf, %v1181_v58  ;;  %v2707_v3 = vsel %vm1232_vm9, -inf, %v1182_v37 }
 0x28f   : > { %v1203_v26 = vmax.f32 %v1183_v21, %v1184_v6  ;;  %v1256_v31 = vmax.f32 %v2705_v29, %v2707_v3 }
 0x291   : > { %v1204_v19 = vrot.slane %v1203_v26, 4  ;;  %v1257_v50 = vrot.slane %v1256_v31, 4 }
 0x292   : > { %v1057_v49 = vpop.f32.mrf.mxu3 }
 0x293   : > { %v1205_v28 = vmax.f32 %v1203_v26, %v1204_v19 }
 0x295   : > { %v1206_v0 = vrot.slane %v1205_v28, 2 }
 0x297   : > { %v1207_v51 = vmax.f32 %v1205_v28, %v1206_v0  ;;  %v1258_v28 = vmax.f32 %v1256_v31, %v1257_v50 }
 0x299   : > { %v1208_v59 = vrot.slane %v1207_v51, 1 }
 0x29a   : > { %v1060_v32 = vpop.f32.mrf.mxu3 }
 0x29b   : > { %v1090_v44 = vmax.f32 %v1057_v49, %v1060_v32  ;;  %v2695_v45 = vmax.f32 %v1207_v51, %v1208_v59 }
 0x29d   : > { %v1091_v2 = vrot.slane %v1090_v44, 4  ;;  %vm1233_vm0 = vcmp.ge.f32.partialorder %v1183_v21, %v2695_v45  ;;  %vm1234_vm1 = vcmp.ge.f32.partialorder %v1184_v6, %v2695_v45 }
 0x29e   : > { %v2709_v16 = vsel %vm1233_vm0, -inf, %v1183_v21  ;;  %v2711_v20 = vsel %vm1234_vm1, -inf, %v1184_v6 }
 0x29f   : > { %v1092_v4 = vmax.f32 %v1090_v44, %v1091_v2  ;;  %v1263_v58 = vmax.f32 %v2709_v16, %v2711_v20 }
 0x2a1   : > { %v1093_v36 = vrot.slane %v1092_v4, 2 }
 0x2a2   : > { %v1063_v25 = vpop.f32.mrf.mxu3 }
 0x2a3   : > { %v1094_v5 = vmax.f32 %v1092_v4, %v1093_v36 }
 0x2a5   : > { %v1095_v39 = vrot.slane %v1094_v5, 1 }
 0x2a7   : > { %v2689_v13 = vmax.f32 %v1094_v5, %v1095_v39  ;;  %v1259_v5 = vrot.slane %v1258_v28, 2 }
 0x2a9   : > { %vm1115_vm8 = vcmp.ge.f32.partialorder %v1057_v49, %v2689_v13  ;;  %vm1116_vm11 = vcmp.ge.f32.partialorder %v1060_v32, %v2689_v13  ;;  %v1260_v59 = vmax.f32 %v1258_v28, %v1259_v5 }
 0x2aa   : > { %v1125_v42 = vsel %vm1115_vm8, -inf, %v1057_v49  ;;  %v1126_v27 = vsel %vm1116_vm11, -inf, %v1060_v32  ;;  %v1066_v63 = vpop.f32.mrf.mxu3  ;;  %v2715_v49 = vsel %vm1230_vm10, -inf, %v1180_v52  ;;  %v1264_v32 = vrot.slane %v1263_v58, 4 }
 0x2ab   : > { %v1150_v40 = vmax.f32 %v1125_v42, %v1126_v27  ;;  %v1097_v30 = vmax.f32 %v1063_v25, %v1066_v63  ;;  %v1249_v37 = vmax.f32 %v2713_v61, %v2715_v49 }
 0x2ac   : > { %v1265_v4 = vmax.f32 %v1263_v58, %v1264_v32 }
 0x2ad   : > { %v1151_v23 = vrot.slane %v1150_v40, 4  ;;  %v1098_v55 = vrot.slane %v1097_v30, 4  ;;  %v1250_v44 = vrot.slane %v1249_v37, 4 }
 0x2ae   : > { %v1266_v39 = vrot.slane %v1265_v4, 2 }
 0x2af   : > { %v1152_v41 = vmax.f32 %v1150_v40, %v1151_v23  ;;  %v1099_v38 = vmax.f32 %v1097_v30, %v1098_v55  ;;  %v1251_v36 = vmax.f32 %v1249_v37, %v1250_v44  ;;  %v1261_v23 = vrot.slane %v1260_v59, 1 }
 0x2b1   : > { %v1153_v11 = vrot.slane %v1152_v41, 2  ;;  %v1100_v46 = vrot.slane %v1099_v38, 2  ;;  %v1252_v7 = vrot.slane %v1251_v36, 2 }
 0x2b3   : > { %v1154_v24 = vmax.f32 %v1152_v41, %v1153_v11  ;;  %v1101_v53 = vmax.f32 %v1099_v38, %v1100_v46  ;;  %v1253_v12 = vmax.f32 %v1251_v36, %v1252_v7 }
 0x2b5   : > { %v1155_v8 = vrot.slane %v1154_v24, 1  ;;  %v1102_v33 = vrot.slane %v1101_v53, 1  ;;  %v1254_v46 = vrot.slane %v1253_v12, 1 }
 0x2b7   : > { %v2719_v26 = vmax.f32 %v1154_v24, %v1155_v8  ;;  %v2721_v14 = vmax.f32 %v1101_v53, %v1102_v33  ;;  %v2739_v8 = vmax.f32 %v1260_v59, %v1261_v23  ;;  %v2743_v37 = vmax.f32 %v1253_v12, %v1254_v46 }
 0x2b9   : > { %vm1175_vm12 = vcmp.ge.f32.partialorder %v1125_v42, %v2719_v26  ;;  %vm1176_vm4 = vcmp.ge.f32.partialorder %v1126_v27, %v2719_v26  ;;  %vm1117_vm6 = vcmp.ge.f32.partialorder %v1063_v25, %v2721_v14  ;;  %vm1118_vm13 = vcmp.ge.f32.partialorder %v1066_v63, %v2721_v14 }
 0x2ba   : > { %v1185_v21 = vsel %vm1175_vm12, -inf, %v1125_v42  ;;  %v1186_v6 = vsel %vm1176_vm4, -inf, %v1126_v27  ;;  %v1127_v15 = vsel %vm1117_vm6, -inf, %v1063_v25  ;;  %v1128_v19 = vsel %vm1118_vm13, -inf, %v1066_v63 }
 0x2bb   : > { %v1210_v52 = vmax.f32 %v1185_v21, %v1186_v6  ;;  %v1157_v56 = vmax.f32 %v1127_v15, %v1128_v19  ;;  %v1267_v27 = vmax.f32 %v1265_v4, %v1266_v39  ;;  %vm1291_vm0 = vcmp.ge.f32.partialorder %v2705_v29, %v2739_v8 }
 0x2bc   : > { %vm1292_vm1 = vcmp.ge.f32.partialorder %v2707_v3, %v2739_v8  ;;  %vm1289_vm12 = vcmp.ge.f32.partialorder %v2713_v61, %v2743_v37  ;;  %vm1290_vm4 = vcmp.ge.f32.partialorder %v2715_v49, %v2743_v37  ;;  %v1301_v32 = vsel %vm1291_vm0, -inf, %v2705_v29 }
 0x2bd   : > { %v1211_v1 = vrot.slane %v1210_v52, 4  ;;  %v1158_v2 = vrot.slane %v1157_v56, 4  ;;  %v1268_v38 = vrot.slane %v1267_v27, 1  ;;  %v1300_v4 = vsel %vm1290_vm4, -inf, %v2715_v49 }
 0x2bf   : > { %v1212_v17 = vmax.f32 %v1210_v52, %v1211_v1  ;;  %v1159_v22 = vmax.f32 %v1157_v56, %v1158_v2  ;;  %v2741_v58 = vmax.f32 %v1267_v27, %v1268_v38  ;;  %v1302_v56 = vsel %vm1292_vm1, -inf, %v2707_v3 }
 0x2c0   : > { %v1316_v29 = vmax.f32 %v1301_v32, %v1302_v56 }
 0x2c1   : > { %v1213_v0 = vrot.slane %v1212_v17, 2  ;;  %v1160_v62 = vrot.slane %v1159_v22, 2  ;;  %vm1293_vm15 = vcmp.ge.f32.partialorder %v2709_v16, %v2741_v58  ;;  %vm1294_vm10 = vcmp.ge.f32.partialorder %v2711_v20, %v2741_v58 }
 0x2c2   : > { %v1303_v44 = vsel %vm1293_vm15, -inf, %v2709_v16  ;;  %v1304_v1 = vsel %vm1294_vm10, -inf, %v2711_v20  ;;  %v1317_v49 = vrot.slane %v1316_v29, 4  ;;  %vm1391_vm10 = vcmask 39936  }
 0x2c3   : > { %v1214_v35 = vmax.f32 %v1212_v17, %v1213_v0  ;;  %v1161_v51 = vmax.f32 %v1159_v22, %v1160_v62  ;;  %v1299_v17 = vsel %vm1289_vm12, -inf, %v2713_v61  ;;  %v1323_v36 = vmax.f32 %v1303_v44, %v1304_v1 }
 0x2c4   : > { %v1309_v16 = vmax.f32 %v1299_v17, %v1300_v4  ;;  %v1165_v44 = vadd.f32 %v2677_v48, %v2665_v47  ;;  %v1166_v17 = vadd.f32 %v2683_v60, %v2671_v34 }
 0x2c5   : > { %v1215_v54 = vrot.slane %v1214_v35, 1  ;;  %v1162_v25 = vrot.slane %v1161_v51, 1 }
 0x2c6   : > { %v1310_v39 = vrot.slane %v1309_v16, 4 }
 0x2c7   : > { %v2731_v42 = vmax.f32 %v1214_v35, %v1215_v54  ;;  %v2733_v63 = vmax.f32 %v1161_v51, %v1162_v25  ;;  %v1324_v35 = vrot.slane %v1323_v36, 4  ;;  %v1318_v25 = vmax.f32 %v1316_v29, %v1317_v49 }
 0x2c8   : > { %v1311_v27 = vmax.f32 %v1309_v16, %v1310_v39 }
 0x2c9   : > { %vm1235_vm8 = vcmp.ge.f32.partialorder %v1185_v21, %v2731_v42  ;;  %vm1236_vm11 = vcmp.ge.f32.partialorder %v1186_v6, %v2731_v42  ;;  %vm1177_vm7 = vcmp.ge.f32.partialorder %v1127_v15, %v2733_v63  ;;  %vm1178_vm9 = vcmp.ge.f32.partialorder %v1128_v19, %v2733_v63 }
 0x2ca   : > { %v1245_v40 = vsel %vm1235_vm8, -inf, %v1185_v21  ;;  %v1246_v30 = vsel %vm1236_vm11, -inf, %v1186_v6  ;;  %v1187_v41 = vsel %vm1177_vm7, -inf, %v1127_v15  ;;  %v1188_v11 = vsel %vm1178_vm9, -inf, %v1128_v19 }
 0x2cb   : > { %v1270_v55 = vmax.f32 %v1245_v40, %v1246_v30  ;;  %v1217_v53 = vmax.f32 %v1187_v41, %v1188_v11  ;;  %v1325_v59 = vmax.f32 %v1323_v36, %v1324_v35  ;;  %v1319_v23 = vrot.slane %v1318_v25, 2 }
 0x2cc   : > { %v1312_v38 = vrot.slane %v1311_v27, 2  ;;  %v1225_v36 = vadd.f32 %v2693_v57, %v1165_v44  ;;  %v1168_v34 = vadd.f32 %v2733_v63, %v2721_v14 }
 0x2cd   : > { %v1271_v24 = vrot.slane %v1270_v55, 4  ;;  %v1218_v31 = vrot.slane %v1217_v53, 4 }
 0x2ce   : > { %v1285_v47 = vadd.f32 %v2739_v8, %v1225_v36 }
 0x2cf   : > { %v1272_v33 = vmax.f32 %v1270_v55, %v1271_v24  ;;  %v1219_v6 = vmax.f32 %v1217_v53, %v1218_v31  ;;  %v1326_v55 = vrot.slane %v1325_v59, 2  ;;  %v1349_v31 = vlaneseq }
 0x2d1   : > { %v1273_v21 = vrot.slane %v1272_v33, 2  ;;  %v1220_v52 = vrot.slane %v1219_v6, 2  ;;  %v1327_v53 = vmax.f32 %v1325_v59, %v1326_v55  ;;  %v1352_v35 = vand.u32 127, %v1349_v31 }
 0x2d2   : > { %v1710_v59 = vmov 8.0  }
 0x2d3   : > { %v1274_v50 = vmax.f32 %v1272_v33, %v1273_v21  ;;  %v1221_v19 = vmax.f32 %v1219_v6, %v1220_v52  ;;  %v1313_v33 = vmax.f32 %v1311_v27, %v1312_v38  ;;  %v1328_v32 = vrot.slane %v1327_v53, 1 }
 0x2d4   : > { %1674 = vrcp.f32 %v1710_v59  ;;  %v1392_v27 = vsel %vm1391_vm10, %v2675_v43, 0.0 }
 0x2d5   : > { %v1275_v15 = vrot.slane %v1274_v50, 1  ;;  %v1222_v28 = vrot.slane %v1221_v19, 1  ;;  %v1314_v56 = vrot.slane %v1313_v33, 1  ;;  %v1329_v16 = vmax.f32 %v1327_v53, %v1328_v32 }
 0x2d7   : > { %v2761_v2 = vmax.f32 %v1274_v50, %v1275_v15  ;;  %v2767_v22 = vmax.f32 %v1221_v19, %v1222_v28  ;;  %v1164_v15 = vadd.f32 %v2679_v18, %v2663_v10  ;;  %v1350_v28 = vshrl.u32 %v1349_v31, 7 }
 0x2d8   : > { %v1167_v10 = vadd.f32 %v2719_v26, %v2689_v13  ;;  %v1315_v48 = vmax.f32 %v1313_v33, %v1314_v56 }
 0x2d9   : > { %vm1295_vm6 = vcmp.ge.f32.partialorder %v1245_v40, %v2761_v2  ;;  %vm1296_vm13 = vcmp.ge.f32.partialorder %v1246_v30, %v2761_v2  ;;  %vm1237_vm8 = vcmp.ge.f32.partialorder %v1187_v41, %v2767_v22  ;;  %vm1238_vm11 = vcmp.ge.f32.partialorder %v1188_v11, %v2767_v22 }
 0x2da   : > { %v1305_v3 = vsel %vm1295_vm6, -inf, %v1245_v40  ;;  %v1306_v0 = vsel %vm1296_vm13, -inf, %v1246_v30  ;;  %v1247_v62 = vsel %vm1237_vm8, -inf, %v1187_v41  ;;  %v1248_v61 = vsel %vm1238_vm11, -inf, %v1188_v11 }
 0x2db   : > { %v1330_v20 = vmax.f32 %v1305_v3, %v1306_v0  ;;  %v1277_v5 = vmax.f32 %v1247_v62, %v1248_v61  ;;  %v1320_v11 = vmax.f32 %v1318_v25, %v1319_v23  ;;  %v1224_v29 = vadd.f32 %v2697_v9, %v1164_v15 }
 0x2dc   : > { %v1226_v0 = vadd.f32 %v2695_v45, %v1166_v17  ;;  %v1227_v60 = vadd.f32 %v2731_v42, %v1167_v10  ;;  %v1228_v13 = vadd.f32 %v2767_v22, %v1168_v34  ;;  %v1353_v39 = vmul.u32 16, %v1350_v28 }
 0x2dd   : > { %v1278_v51 = vrot.slane %v1277_v5, 4  ;;  %v1331_v7 = vrot.slane %v1330_v20, 4  ;;  %v1321_v19 = vrot.slane %v1320_v11, 1  ;;  %v1284_v45 = vadd.f32 %v2743_v37, %v1224_v29 }
 0x2de   : > { %v1286_v57 = vadd.f32 %v2741_v58, %v1226_v0  ;;  %v1287_v26 = vadd.f32 %v2761_v2, %v1227_v60  ;;  %vm1354_vm0 = vcmp.ge.s32.totalorder %v1352_v35, %v1353_v39  ;;  %v1709_v25 = vmov 0.0125  }
 0x2df   : > { %v1279_v54 = vmax.f32 %v1277_v5, %v1278_v51  ;;  %v1332_v40 = vmax.f32 %v1330_v20, %v1331_v7  ;;  %v1322_v18 = vmax.f32 %v1320_v11, %v1321_v19  ;;  %v1344_v7 = vadd.f32 %v1315_v48, %v1284_v45 }
 0x2e0   : > { %v1346_v8 = vadd.f32 %v1329_v16, %v1286_v57 }
 0x2e1   : > { %v1280_v12 = vrot.slane %v1279_v54, 2  ;;  %v1333_v24 = vrot.slane %v1332_v40, 2  ;;  %v1345_v5 = vadd.f32 %v1322_v18, %v1285_v47 }
 0x2e3   : > { %v1281_v30 = vmax.f32 %v1279_v54, %v1280_v12  ;;  %v1334_v50 = vmax.f32 %v1332_v40, %v1333_v24  ;;  %v1365_v58 = vsel %vm977_vm2, %v1345_v5, %v1344_v7  ;;  %v1393_v12 = vrot.slane %v1392_v27, 4  ;;  %v1675_v40 = vpop.eup %1674  ;;  %v1390_v7 = vld [vmem:[%s2814_s3] sm:$0xf] }
 0x2e4   : > { %v1366_v37 = vsel %vm979_vm14, %v1346_v8, %v1365_v58  ;;  %v1400_v23 = vmul.f32 8.0, %v1675_v40  ;;  %vm1404_vm2 = vweird.f32 %v1675_v40  ;;  %v1463_v59 = vperm.slane %v1390_v7, 1 }
 0x2e5   : > { %v1282_v46 = vrot.slane %v1281_v30, 1  ;;  %v1335_v4 = vrot.slane %v1334_v50, 1 }
 0x2e6   : > { %v1401_v38 = vsub.f32 1.0, %v1400_v23 }
 0x2e7   : > { %v1283_v41 = vmax.f32 %v1281_v30, %v1282_v46  ;;  %v1336_v9 = vmax.f32 %v1334_v50, %v1335_v4  ;;  %v1394_v30 = vadd.f32 %v1393_v12, %v1392_v27 }
 0x2e8   : > { %v1402_v24 = vmul.f32 %v1675_v40, %v1401_v38  ;;  %v1471_v38 = vstv %s1576_s10 }
 0x2e9   : > { %vm1297_vm7 = vcmp.ge.f32.partialorder %v1247_v62, %v1283_v41  ;;  %vm1298_vm9 = vcmp.ge.f32.partialorder %v1248_v61, %v1283_v41  ;;  %v1347_v14 = vadd.f32 %v1336_v9, %v1287_v26  ;;  %v1288_v63 = vadd.f32 %v1283_v41, %v1228_v13 }
 0x2ea   : > { %v1307_v21 = vsel %vm1297_vm7, -inf, %v1247_v62  ;;  %v1308_v6 = vsel %vm1298_vm9, -inf, %v1248_v61  ;;  %v1355_v62 = vadd.s32 1, %v1350_v28  ;;  %v1395_v55 = vrot.slane %v1394_v30, 2 }
 0x2eb   : > { %v1337_v52 = vmax.f32 %v1307_v21, %v1308_v6  ;;  %v1367_v22 = vsel %vm981_vm3, %v1347_v14, %v1366_v37  ;;  %v1403_v11 = vadd.f32 %v1675_v40, %v1402_v24 }
 0x2ec   : > { %v1356_v51 = vmul.u32 16, %v1355_v62  ;;  %v1396_v46 = vadd.f32 %v1395_v55, %v1394_v30  ;;  %v1469_v55 = vstv %s1467_s9 }
 0x2ed   : > { %v1338_v1 = vrot.slane %v1337_v52, 4  ;;  %v1405_v33 = vsel %vm1404_vm2, %v1675_v40, %v1403_v11  ;;  %v1465_v40 = vperm.slane %v1390_v7, 3 }
 0x2ee   : > { %vm1357_vm1 = vcmp.lt.s32.totalorder %v1352_v35, %v1356_v51  ;;  %v1397_v41 = vrot.slane %v1396_v46, 1 }
 0x2ef   : > { %v1339_v3 = vmax.f32 %v1337_v52, %v1338_v1  ;;  %vm1358_vm15 = vmand %vm1354_vm0, %vm1357_vm1 }
 0x2f0   : > { %v1398_v53 = vadd.f32 %v1397_v41, %v1396_v46 }
 0x2f1   : > { %v1340_v20 = vrot.slane %v1339_v3, 2 }
 0x2f2   : > { %v1406_v31 = vmul.f32 %v1405_v33, %v1398_v53 }
 0x2f3   : > { %v1341_v61 = vmax.f32 %v1339_v3, %v1340_v20 }
 0x2f4   : > { %v1407_v21 = vsub.f32 %v2675_v43, %v1406_v31 }
 0x2f5   : > { %v1342_v49 = vrot.slane %v1341_v61, 1 }
 0x2f6   : > { %v1408_v6 = vmul.f32 %v1407_v21, %v1407_v21 }
 0x2f7   : > { %v1343_v42 = vmax.f32 %v1341_v61, %v1342_v49 }
 0x2f8   : > { %v1409_v50 = vsel %vm1391_vm10, %v1408_v6, 0.0 }
 0x2f9   : > { %v1348_v54 = vadd.f32 %v1343_v42, %v1288_v63  ;;  %v1410_v52 = vrot.slane %v1409_v50, 4 }
 0x2fb   : > { %v1368_v2 = vsel %vm983_vm5, %v1348_v54, %v1367_v22  ;;  %v1411_v15 = vadd.f32 %v1410_v52, %v1409_v50  ;;  %v1429_v54 = vperm.slane %v1390_v7, 0 }
 0x2fc   : > { %1385 = vmatpush.xpose.msra.mxu3 %v1368_v2 }
 0x2fd   : > { %v1412_v19 = vrot.slane %v1411_v15, 2 }
 0x2ff   : > { %1575 = vmatmul.msk.f32.vlgmr.msra.gmra.mxu3 %vm1358_vm15, %v1709_v25  ;;  %v1413_v32 = vadd.f32 %v1412_v19, %v1411_v15  ;;  %v1431_v25 = vperm.slane %v1390_v7, 2 }
 0x301   : > { %v1414_v44 = vrot.slane %v1413_v32, 1 }
 0x303   : > { %v1415_v4 = vadd.f32 %v1414_v44, %v1413_v32 }
 0x305   : > { %v1416_v3 = vmul.f32 %v1415_v4, %v1405_v33 }
 0x307   : > { %v1417_v43 = vadd.f32 1e-05, %v1416_v3 }
 0x309   : > { %1676 = vrsqrt.f32 %v1417_v43  ;;  %vm1424_vm3 = vweird.f32 %v1417_v43 }
 0x30f   : > { %v1677_v62 = vpop.eup %1676 }
 0x310   : > { %v1419_v57 = vmul.f32 %v1677_v62, %v1417_v43  ;;  %vm1425_vm14 = vweird.f32 %v1677_v62 }
 0x311   : > { %vm1426_vm5 = vmor %vm1424_vm3, %vm1425_vm14 }
 0x312   : > { %v1420_v61 = vmul.f32 %v1677_v62, %v1419_v57 }
 0x314   : > { %v1421_v5 = vmul.f32 0.5, %v1420_v61 }
 0x316   : > { %v1422_v49 = vsub.f32 1.5, %v1421_v5 }
 0x318   : > { %v1423_v35 = vmul.f32 %v1677_v62, %v1422_v49 }
 0x31a   : > { %v1427_v14 = vsel %vm1426_vm5, %v1677_v62, %v1423_v35 }
 0x31b   : > { %v1428_v58 = vmul.f32 %v1427_v14, %v1407_v21 }
 0x31d   : > { %v1430_v2 = vmul.f32 %v1429_v54, %v1428_v58 }
 0x31f   : > { %v1432_v30 = vadd.f32 %v1431_v25, %v1430_v2 }
 0x321   : > { %v1470_v24 = vmul.f32 %v1469_v55, %v1432_v30 }
 0x382   : > { %v1387_v56 = vpop.f32.mrf.mxu3 }
 0x383   : > { %v1433_v1 = vsel %vm1391_vm10, %v1387_v56, 0.0 }
 0x384   : > { %v1434_v28 = vrot.slane %v1433_v1, 4 }
 0x386   : > { %v1435_v17 = vadd.f32 %v1434_v28, %v1433_v1 }
 0x388   : > { %v1436_v29 = vrot.slane %v1435_v17, 2 }
 0x38a   : > { %v1437_v36 = vadd.f32 %v1436_v29, %v1435_v17 }
 0x38c   : > { %v1438_v0 = vrot.slane %v1437_v36, 1 }
 0x38e   : > { %v1439_v10 = vadd.f32 %v1438_v0, %v1437_v36 }
 0x390   : > { %v1440_v18 = vmul.f32 %v1439_v10, %v1405_v33 }
 0x392   : > { %v1441_v16 = vsub.f32 %v1387_v56, %v1440_v18 }
 0x394   : > { %v1442_v47 = vmul.f32 %v1441_v16, %v1441_v16 }
 0x396   : > { %v1443_v48 = vsel %vm1391_vm10, %v1442_v47, 0.0 }
 0x397   : > { %v1444_v20 = vrot.slane %v1443_v48, 4 }
 0x399   : > { %v1445_v34 = vadd.f32 %v1444_v20, %v1443_v48 }
 0x39b   : > { %v1446_v60 = vrot.slane %v1445_v34, 2 }
 0x39d   : > { %v1447_v9 = vadd.f32 %v1446_v60, %v1445_v34 }
 0x39f   : > { %v1448_v45 = vrot.slane %v1447_v9, 1 }
 0x3a1   : > { %v1449_v13 = vadd.f32 %v1448_v45, %v1447_v9 }
 0x3a3   : > { %v1450_v26 = vmul.f32 %v1449_v13, %v1405_v33 }
 0x3a5   : > { %v1451_v8 = vadd.f32 1e-05, %v1450_v26 }
 0x3a7   : > { %1678 = vrsqrt.f32 %v1451_v8  ;;  %vm1458_vm4 = vweird.f32 %v1451_v8 }
 0x3ad   : > { %v1679_v39 = vpop.eup %1678 }
 0x3ae   : > { %v1453_v51 = vmul.f32 %v1679_v39, %v1451_v8  ;;  %vm1459_vm12 = vweird.f32 %v1679_v39 }
 0x3af   : > { %vm1460_vm6 = vmor %vm1458_vm4, %vm1459_vm12 }
 0x3b0   : > { %v1454_v63 = vmul.f32 %v1679_v39, %v1453_v51 }
 0x3b2   : > { %v1455_v42 = vmul.f32 0.5, %v1454_v63 }
 0x3b4   : > { %v1456_v37 = vsub.f32 1.5, %v1455_v42 }
 0x3b6   : > { %v1457_v22 = vmul.f32 %v1679_v39, %v1456_v37 }
 0x3b8   : > { %v1461_v27 = vsel %vm1460_vm6, %v1679_v39, %v1457_v22 }
 0x3b9   : > { %v1462_v12 = vmul.f32 %v1461_v27, %v1441_v16 }
 0x3bb   : > { %v1464_v23 = vmul.f32 %v1463_v59, %v1462_v12 }
 0x3bd   : > { %v1466_v46 = vadd.f32 %v1465_v40, %v1464_v23 }
 0x3bf   : > { %v1472_v41 = vmul.f32 %v1471_v38, %v1466_v46 }
 0x3c1   : > { %v1473_v11 = vadd.f32 %v1472_v41, %v1470_v24 }
 0x3c3   : > { %1474 = vst.msk [vmem:[%s236_s14] sm:$0xff] %vm1391_vm10, %v1473_v11 }
 0x3c4 PF: > { %s16_s18 = sadd.s32 1, %s1705_s18  }
 0x3c5   : > { %p13_p7 = scmp.ge.s32.totalorder %s16_s18, 4  }
 0x3c7   :  { %15 = sbr.rel (!%p13_p7) target bundleno = 1 (0x1), region = 75 }
 0x3cc   :  { %1494 = vsyncpa [#allocation3], 1 }
 0x3cd   :  { %1496 = vsyncpa [#allocation3 + $0x1], 1 }

</bundles_post_ra>
